<compile_context>
chip_gen: v7x
topology: tpu7x:2x2x1
jax: 0.10.0
libtpu: 0.0.40
codegen_flags: <defaults>
</compile_context>

<pallas_src>
import jax
import jax.numpy as jnp
from jax.experimental import pallas as pl
from jax.experimental.pallas import tpu as pltpu

HID = 16  # A3TGCN out_channels == LSTM hidden size (fixed by the module)


# ----------------------------------------------------------------------------
# Graph glue: dense normalized adjacency equivalent to PyG gcn_norm
# ----------------------------------------------------------------------------
def gcn_norm_dense(edge_index, edge_weight, num_nodes):
    """A[i, j] = norm coefficient for message j -> i, so conv(X) = A @ (X W) + b."""
    src, dst = edge_index[0], edge_index[1]
    w = edge_weight.astype(jnp.float32)
    is_loop = src == dst
    # add_remaining_self_loops: keep existing self-loop weights, fill missing with 1.0
    loop_w = jnp.ones((num_nodes,), jnp.float32)
    loop_w = loop_w.at[jnp.where(is_loop, src, num_nodes)].set(w, mode="drop")
    w = jnp.where(is_loop, 0.0, w)
    nodes = jnp.arange(num_nodes, dtype=src.dtype)
    all_src = jnp.concatenate([src, nodes])
    all_dst = jnp.concatenate([dst, nodes])
    all_w = jnp.concatenate([w, loop_w])
    deg = jnp.zeros((num_nodes,), jnp.float32).at[all_dst].add(all_w)
    dinv = jnp.where(deg > 0, jax.lax.rsqrt(deg), 0.0)
    norm = dinv[all_src] * all_w * dinv[all_dst]
    return jnp.zeros((num_nodes, num_nodes), jnp.float32).at[all_dst, all_src].add(norm)


# ----------------------------------------------------------------------------
# Host-side algebraic pre-composition (exact; H is always None -> zero hidden)
# ----------------------------------------------------------------------------
def precompose_params(probs, wg, bg, wl, bl,
                      wih1, whh1, b1, wih2, whh2, b2, wlin, blin, p_in):
    f = wg.shape[1]
    h = HID

    def hdot(a, b):  # host matmuls at full f32 precision
        return jnp.dot(a, b, precision=jax.lax.Precision.HIGHEST)

    # effective GCN->gate weights for z (g=0) and h~ (g=2); r-gate (g=1) is dead
    w_eff_z = hdot(wg[0], wl[0, :h, :])                 # (F, H)
    b_eff_z = hdot(bg[0], wl[0, :h, :]) + bl[0]         # (1, H)
    w_eff_h = hdot(wg[2], wl[2, :h, :])
    b_eff_h = hdot(bg[2], wl[2, :h, :]) + bl[2]

    # block-diagonal layout over periods so the per-period GCN gate matmuls become
    # one (N, F*P) x (F*P, 2*P*H) matmul; row index is f*P + p (matching
    # x.reshape(B, N, F*P)), column index is p*H + h (z half) / P*H + p*H + h (h half).
    eye_p = jnp.eye(p_in, dtype=jnp.float32)
    wz_big = (w_eff_z[:, None, None, :] * eye_p[None, :, :, None]).reshape(f * p_in, p_in * h)
    wh_big = (w_eff_h[:, None, None, :] * eye_p[None, :, :, None]).reshape(f * p_in, p_in * h)
    w_gcn = jnp.concatenate([wz_big, wh_big], axis=1)                  # (F*P, 2*P*H)
    b_gcn = jnp.concatenate([jnp.tile(b_eff_z, (1, p_in)),
                             jnp.tile(b_eff_h, (1, p_in))], axis=1)    # (1, 2*P*H)

    # fold the probs-weighted period sum into the LSTM layer-1 input weight:
    # (sum_p probs[p] * h_p) @ Wih1  ==  h_all(N, P*H) @ w_x1
    w_x1 = (probs[:, None, None] * wih1[None]).reshape(p_in * h, 4 * h)  # (P*H, 4H)

    w_rec = jnp.concatenate([whh1, wih2, whh2], axis=0)   # (3H, 4H) packed slab
    b_lstm = jnp.concatenate([b1, b2], axis=1)            # (1, 8H)  packed biases
    w_head_t = wlin.T                                     # (D_out, H)
    b_head_t = blin.T                                     # (D_out, 1)
    return w_gcn, b_gcn, w_x1, w_rec, b_lstm, w_head_t, b_head_t


# ----------------------------------------------------------------------------
# Fused kernel: A3TGCN2 cell (all periods) + 2-layer LSTM + head Linear
# grid = (B,), one straight-line body per batch element ("parallel" -> 2 TCs on v7x)
# ----------------------------------------------------------------------------
def _fused_kernel(x_ref,                      # (1, N, F*P_in)
                  a_ref,                      # (N, N) normalized adjacency
                  wgcn_ref, bgcn_ref,         # (F*P, 2*P*H), (1, 2*P*H)
                  wx1_ref,                    # (P*H, 4H)  probs-sum folded into Wih1
                  wrec_ref,                   # (3H, 4H) = [Whh1; Wih2; Whh2]
                  blstm_ref,                  # (1, 8H)  = [b1, b2]
                  whead_ref, bhead_ref,       # (D_out, H), (D_out, 1)
                  out_ref):                   # (1, D_out, T*N)
    n = x_ref.shape[1]
    h = HID
    ph = wx1_ref.shape[0]              # P_in * H
    t_out = out_ref.shape[2] // n      # P_out (static)

    # ---- A3TGCN2 cell: all periods in one pass (two lane-256 MXU ops) -----
    x = x_ref[0]                                                            # (N, F*P)
    xw = jnp.dot(x, wgcn_ref[...], preferred_element_type=jnp.float32)      # (N, 2*P*H)
    pre = jnp.dot(a_ref[...], xw, preferred_element_type=jnp.float32) + bgcn_ref[...]
    z = jax.nn.sigmoid(pre[:, :ph])
    h_tilde = jnp.tanh(pre[:, ph:])
    h_all = (1.0 - z) * h_tilde        # (N, P*H): per-period TGCN2 output (H0 == 0)

    # ---- LSTM layer-1 input matmul (input is constant over time -> hoisted) ----
    b_lstm = blstm_ref[...]
    b1 = b_lstm[:, :4 * h]
    b2 = b_lstm[:, 4 * h:]
    x_ih1 = jnp.dot(h_all, wx1_ref[...], preferred_element_type=jnp.float32) + b1  # (N,4H)

    w_rec = wrec_ref[...]
    w_hh1 = w_rec[:h]                  # (H, 4H)
    w_l2 = w_rec[h:]                   # (2H, 4H) == [Wih2; Whh2] fused

    def gates(p):                      # PyTorch gate order (i, f, g, o)
        return (jax.nn.sigmoid(p[:, :h]),
                jax.nn.sigmoid(p[:, h:2 * h]),
                jnp.tanh(p[:, 2 * h:3 * h]),
                jax.nn.sigmoid(p[:, 3 * h:]))

    zero = jnp.zeros((n, h), jnp.float32)
    h1, c1, h2, c2 = zero, zero, zero, zero
    h2_steps = []
    for _ in range(t_out):             # static unroll: cross-iteration LLO overlap
        pre1 = x_ih1 + jnp.dot(h1, w_hh1, preferred_element_type=jnp.float32)
        i1, f1, g1, o1 = gates(pre1)
        c1 = f1 * c1 + i1 * g1
        h1 = o1 * jnp.tanh(c1)
        pre2 = jnp.dot(jnp.concatenate([h1, h2], axis=1), w_l2,
                       preferred_element_type=jnp.float32) + b2
        i2, f2, g2, o2 = gates(pre2)
        c2 = f2 * c2 + i2 * g2
        h2 = o2 * jnp.tanh(c2)
        h2_steps.append(h2)

    # ---- head Linear hoisted out of the loop; single lane-dense store ------
    h2_stack = jnp.concatenate(h2_steps, axis=0)                 # (T*N, H)
    y_t = jax.lax.dot_general(                                   # A @ B^T -> (D_out, T*N)
        whead_ref[...], h2_stack, (((1,), (1,)), ((), ())),
        preferred_element_type=jnp.float32)
    out_ref[0] = (y_t + bhead_ref[...]).astype(out_ref.dtype)


def traffic_a3tgcn_lstm_forward(x, a_norm, params, periods_out):
    """x: (B, N, F, P_in) as in the PyTorch module. Returns (B, N, D_out, P_out)."""
    w_gcn, b_gcn, w_x1, w_rec, b_lstm, w_head_t, b_head_t = params
    b_sz, n, f, p_in = x.shape
    d_out = w_head_t.shape[0]
    x_flat = x.reshape(b_sz, n, f * p_in)      # column index f*P + p (pure reshape)

    grid_spec = pltpu.PrefetchScalarGridSpec(
        num_scalar_prefetch=0,
        grid=(b_sz,),
        in_specs=[
            pl.BlockSpec((1, n, f * p_in), lambda b: (b, 0, 0)),
            pl.BlockSpec(a_norm.shape, lambda b: (0, 0)),
            pl.BlockSpec(w_gcn.shape, lambda b: (0, 0)),
            pl.BlockSpec(b_gcn.shape, lambda b: (0, 0)),
            pl.BlockSpec(w_x1.shape, lambda b: (0, 0)),
            pl.BlockSpec(w_rec.shape, lambda b: (0, 0)),
            pl.BlockSpec(b_lstm.shape, lambda b: (0, 0)),
            pl.BlockSpec(w_head_t.shape, lambda b: (0, 0)),
            pl.BlockSpec(b_head_t.shape, lambda b: (0, 0)),
        ],
        out_specs=pl.BlockSpec((1, d_out, periods_out * n), lambda b: (b, 0, 0)),
    )
    out = pl.pallas_call(
        _fused_kernel,
        out_shape=jax.ShapeDtypeStruct((b_sz, d_out, periods_out * n), jnp.float32),
        grid_spec=grid_spec,
        compiler_params=pltpu.CompilerParams(dimension_semantics=("parallel",)),
    )(x_flat, a_norm, w_gcn, b_gcn, w_x1, w_rec, b_lstm, w_head_t, b_head_t)
    # (B, D_out, T*N) -> (B, N, D_out, P_out): layout plumbing in the wrapper.
    return out.reshape(b_sz, d_out, periods_out, n).transpose(0, 3, 1, 2)


# ----------------------------------------------------------------------------
# Pure-JAX reference (mirrors the un-simplified PyTorch forward semantics)
# ----------------------------------------------------------------------------
def reference_forward(x, a, probs, wg, bg, wl, bl,
                      wih1, whh1, b1, wih2, whh2, b2, wlin, blin, t_out):
    b_sz, n, f, p_in = x.shape
    h_acc = jnp.zeros((b_sz, n, HID), jnp.float32)
    for p in range(p_in):
        xp = x[..., p]
        h0 = jnp.zeros((b_sz, n, HID), jnp.float32)

        def conv(g):
            xw = jnp.einsum("bnf,fh->bnh", xp, wg[g])
            return jnp.einsum("mn,bnh->bmh", a, xw) + bg[g][None]

        def gate(c, ht, g):
            return (jnp.einsum("bnh,hk->bnk", c, wl[g, :HID])
                    + jnp.einsum("bnh,hk->bnk", ht, wl[g, HID:]) + bl[g][None])

        z = jax.nn.sigmoid(gate(conv(0), h0, 0))
        r = jax.nn.sigmoid(gate(conv(1), h0, 1))
        h_t = jnp.tanh(gate(conv(2), h0 * r, 2))
        h_acc = h_acc + probs[p] * (z * h0 + (1.0 - z) * h_t)

    outs = []
    for b in range(b_sz):
        xk = h_acc[b]
        h1 = c1 = h2 = c2 = jnp.zeros((n, HID), jnp.float32)
        per_t = []
        for _ in range(t_out):
            pre1 = xk @ wih1 + b1 + h1 @ whh1
            i1 = jax.nn.sigmoid(pre1[:, :HID]); f1 = jax.nn.sigmoid(pre1[:, HID:2 * HID])
            g1 = jnp.tanh(pre1[:, 2 * HID:3 * HID]); o1 = jax.nn.sigmoid(pre1[:, 3 * HID:])
            c1 = f1 * c1 + i1 * g1
            h1 = o1 * jnp.tanh(c1)
            pre2 = h1 @ wih2 + b2 + h2 @ whh2
            i2 = jax.nn.sigmoid(pre2[:, :HID]); f2 = jax.nn.sigmoid(pre2[:, HID:2 * HID])
            g2 = jnp.tanh(pre2[:, 2 * HID:3 * HID]); o2 = jax.nn.sigmoid(pre2[:, 3 * HID:])
            c2 = f2 * c2 + i2 * g2
            h2 = o2 * jnp.tanh(c2)
            per_t.append(h2 @ wlin + blin)
        outs.append(jnp.stack(per_t))
    return jnp.transpose(jnp.stack(outs), (0, 2, 3, 1))   # (B, N, D_out, P_out)


if __name__ == "__main__":
    B, N, F = 2, 16, 4            # batch_size, num_nodes, node_features
    P_IN, P_OUT, D_OUT = 8, 4, 2  # periods_in, periods_out, node_out_features
    E = 48

    key = jax.random.PRNGKey(0)
    k = iter(jax.random.split(key, 24))

    # graph
    src = jax.random.randint(next(k), (E,), 0, N, dtype=jnp.int32)
    dst = jax.random.randint(next(k), (E,), 0, N, dtype=jnp.int32)
    edge_index = jnp.stack([src, dst])
    edge_features = jax.random.uniform(next(k), (E,), jnp.float32, 0.5, 1.5)
    a_norm = gcn_norm_dense(edge_index, edge_features, N)

    # node features (B, N, F, P_in)
    x = jax.random.normal(next(k), (B, N, F, P_IN), jnp.float32)

    # ---- deterministic synthetic parameters (dropout_rate is unused in forward) ----
    def nrm(kk, shape, s=0.2):
        return s * jax.random.normal(kk, shape, jnp.float32)

    attention = jax.random.uniform(next(k), (P_IN,), jnp.float32)
    probs = jax.nn.softmax(attention)

    wg = nrm(next(k), (3, F, HID))            # GCNConv z/r/h weights (transposed)
    bg = nrm(next(k), (3, 1, HID), 0.1)       # GCNConv z/r/h biases
    wl = nrm(next(k), (3, 2 * HID, HID))      # linear_z/r/h weights (transposed)
    bl = nrm(next(k), (3, 1, HID), 0.1)       # linear_z/r/h biases

    wih1 = nrm(next(k), (HID, 4 * HID))       # LSTM layer 0 (gate order i,f,g,o)
    whh1 = nrm(next(k), (HID, 4 * HID))
    b1 = nrm(next(k), (1, 4 * HID), 0.1) + nrm(next(k), (1, 4 * HID), 0.1)  # b_ih+b_hh
    wih2 = nrm(next(k), (HID, 4 * HID))       # LSTM layer 1
    whh2 = nrm(next(k), (HID, 4 * HID))
    b2 = nrm(next(k), (1, 4 * HID), 0.1) + nrm(next(k), (1, 4 * HID), 0.1)
    wlin = nrm(next(k), (HID, D_OUT))         # head Linear (transposed)
    blin = nrm(next(k), (1, D_OUT), 0.1)

    # ---- host-side exact pre-composition + fused Pallas forward ----
    params = precompose_params(probs, wg, bg, wl, bl, wih1, whh1, b1,
                               wih2, whh2, b2, wlin, blin, P_IN)
    out = traffic_a3tgcn_lstm_forward(x, a_norm, params, P_OUT)   # (B, N, D_out, P_out)
    out = jax.block_until_ready(out)

    assert out.shape == (B, N, D_OUT, P_OUT), out.shape
    assert bool(jnp.all(jnp.isfinite(out)))

    # ---- correctness vs pure-JAX reference ----
    ref = reference_forward(x, a_norm, probs, wg, bg, wl, bl,
                            wih1, whh1, b1, wih2, whh2, b2, wlin, blin, P_OUT)
    err = float(jnp.max(jnp.abs(out - ref)))
    # The kernel algebra is exact; the residual is set by the TPU MXU's default
    # f32 matmul rounding (typically ~1e-3 here), so assert a tightened bound.
    assert err < 1e-2, f"max abs err {err}"

    print("KERNEL_OK")
</pallas_src>

<mosaic_0001>
module attributes {stable_mosaic.version = 11 : i64} {
  func.func @_fused_kernel(%arg0: i32, %arg1: memref<1x16x32xf32, #tpu.memory_space<vmem>>, %arg2: memref<16x16xf32, #tpu.memory_space<vmem>>, %arg3: memref<32x256xf32, #tpu.memory_space<vmem>>, %arg4: memref<1x256xf32, #tpu.memory_space<vmem>>, %arg5: memref<128x64xf32, #tpu.memory_space<vmem>>, %arg6: memref<48x64xf32, #tpu.memory_space<vmem>>, %arg7: memref<1x128xf32, #tpu.memory_space<vmem>>, %arg8: memref<2x16xf32, #tpu.memory_space<vmem>>, %arg9: memref<2x1xf32, #tpu.memory_space<vmem>>, %arg10: memref<1x2x64xf32, #tpu.memory_space<vmem>>) attributes {dimension_semantics = [#tpu.dimension_semantics<parallel>], iteration_bounds = array<i64: 2>, scalar_prefetch = 0 : i64, scratch_operands = 0 : i64, tpu.core_type = #tpu.core_type<tc>, window_params = [{transform_indices = @transform_0, window_bounds = array<i64: 1, 16, 32>}, {pipeline_mode = #tpu.pipeline_mode<synchronous>, transform_indices = @transform_1, window_bounds = array<i64: 16, 16>}, {pipeline_mode = #tpu.pipeline_mode<synchronous>, transform_indices = @transform_2, window_bounds = array<i64: 32, 256>}, {pipeline_mode = #tpu.pipeline_mode<synchronous>, transform_indices = @transform_3, window_bounds = array<i64: 1, 256>}, {pipeline_mode = #tpu.pipeline_mode<synchronous>, transform_indices = @transform_4, window_bounds = array<i64: 128, 64>}, {pipeline_mode = #tpu.pipeline_mode<synchronous>, transform_indices = @transform_5, window_bounds = array<i64: 48, 64>}, {pipeline_mode = #tpu.pipeline_mode<synchronous>, transform_indices = @transform_6, window_bounds = array<i64: 1, 128>}, {pipeline_mode = #tpu.pipeline_mode<synchronous>, transform_indices = @transform_7, window_bounds = array<i64: 2, 16>}, {pipeline_mode = #tpu.pipeline_mode<synchronous>, transform_indices = @transform_8, window_bounds = array<i64: 2, 1>}, {transform_indices = @transform_9, window_bounds = array<i64: 1, 2, 64>}]} {
    %c0 = arith.constant 0 : index
    %c0_0 = arith.constant 0 : index
    %c0_1 = arith.constant 0 : index
    %0 = vector.load %arg1[%c0, %c0_0, %c0_1] : memref<1x16x32xf32, #tpu.memory_space<vmem>>, vector<1x16x32xf32>
    %1 = vector.shape_cast %0 : vector<1x16x32xf32> to vector<16x32xf32>
    %c0_2 = arith.constant 0 : index
    %c0_3 = arith.constant 0 : index
    %2 = vector.load %arg3[%c0_2, %c0_3] : memref<32x256xf32, #tpu.memory_space<vmem>>, vector<32x256xf32>
    %cst = arith.constant dense<0.000000e+00> : vector<16x256xf32>
    %3 = tpu.matmul %1, %2, %cst {dimension_numbers = #tpu.dot_dimension_numbers<[1], [0], [0], [1], [0, 0, 1, 1], [], []>} : vector<16x32xf32>, vector<32x256xf32>, vector<16x256xf32> -> vector<16x256xf32>
    %c0_4 = arith.constant 0 : index
    %c0_5 = arith.constant 0 : index
    %4 = vector.load %arg2[%c0_4, %c0_5] : memref<16x16xf32, #tpu.memory_space<vmem>>, vector<16x16xf32>
    %cst_6 = arith.constant dense<0.000000e+00> : vector<16x256xf32>
    %5 = tpu.matmul %4, %3, %cst_6 {dimension_numbers = #tpu.dot_dimension_numbers<[1], [0], [0], [1], [0, 0, 1, 1], [], []>} : vector<16x16xf32>, vector<16x256xf32>, vector<16x256xf32> -> vector<16x256xf32>
    %c0_7 = arith.constant 0 : index
    %c0_8 = arith.constant 0 : index
    %6 = vector.load %arg4[%c0_7, %c0_8] : memref<1x256xf32, #tpu.memory_space<vmem>>, vector<1x256xf32>
    %7 = vector.broadcast %6 : vector<1x256xf32> to vector<16x256xf32>
    %8 = arith.addf %5, %7 : vector<16x256xf32>
    %9 = vector.extract_strided_slice %8 {offsets = [0, 0], sizes = [16, 128], strides = [1, 1]} : vector<16x256xf32> to vector<16x128xf32>
    %10 = arith.negf %9 : vector<16x128xf32>
    %11 = math.exp %10 : vector<16x128xf32>
    %cst_9 = arith.constant 1.000000e+00 : f32
    %12 = vector.broadcast %cst_9 : f32 to vector<16x128xf32>
    %13 = arith.addf %12, %11 : vector<16x128xf32>
    %14 = arith.divf %12, %13 : vector<16x128xf32>
    %15 = vector.extract_strided_slice %8 {offsets = [0, 128], sizes = [16, 128], strides = [1, 1]} : vector<16x256xf32> to vector<16x128xf32>
    %16 = math.tanh %15 : vector<16x128xf32>
    %cst_10 = arith.constant 1.000000e+00 : f32
    %17 = vector.broadcast %cst_10 : f32 to vector<16x128xf32>
    %18 = arith.subf %17, %14 : vector<16x128xf32>
    %19 = arith.mulf %18, %16 : vector<16x128xf32>
    %c0_11 = arith.constant 0 : index
    %c0_12 = arith.constant 0 : index
    %20 = vector.load %arg7[%c0_11, %c0_12] : memref<1x128xf32, #tpu.memory_space<vmem>>, vector<1x128xf32>
    %21 = vector.extract_strided_slice %20 {offsets = [0, 0], sizes = [1, 64], strides = [1, 1]} : vector<1x128xf32> to vector<1x64xf32>
    %22 = vector.extract_strided_slice %20 {offsets = [0, 64], sizes = [1, 64], strides = [1, 1]} : vector<1x128xf32> to vector<1x64xf32>
    %c0_13 = arith.constant 0 : index
    %c0_14 = arith.constant 0 : index
    %23 = vector.load %arg5[%c0_13, %c0_14] : memref<128x64xf32, #tpu.memory_space<vmem>>, vector<128x64xf32>
    %cst_15 = arith.constant dense<0.000000e+00> : vector<16x64xf32>
    %24 = tpu.matmul %19, %23, %cst_15 {dimension_numbers = #tpu.dot_dimension_numbers<[1], [0], [0], [1], [0, 0, 1, 1], [], []>} : vector<16x128xf32>, vector<128x64xf32>, vector<16x64xf32> -> vector<16x64xf32>
    %25 = vector.broadcast %21 : vector<1x64xf32> to vector<16x64xf32>
    %26 = arith.addf %24, %25 : vector<16x64xf32>
    %c0_16 = arith.constant 0 : index
    %c0_17 = arith.constant 0 : index
    %27 = vector.load %arg6[%c0_16, %c0_17] : memref<48x64xf32, #tpu.memory_space<vmem>>, vector<48x64xf32>
    %28 = vector.extract_strided_slice %27 {offsets = [0, 0], sizes = [16, 64], strides = [1, 1]} : vector<48x64xf32> to vector<16x64xf32>
    %29 = vector.extract_strided_slice %27 {offsets = [16, 0], sizes = [32, 64], strides = [1, 1]} : vector<48x64xf32> to vector<32x64xf32>
    %cst_18 = arith.constant 0.000000e+00 : f32
    %30 = vector.broadcast %cst_18 : f32 to vector<16x16xf32>
    %cst_19 = arith.constant dense<0.000000e+00> : vector<16x64xf32>
    %31 = tpu.matmul %30, %28, %cst_19 {dimension_numbers = #tpu.dot_dimension_numbers<[1], [0], [0], [1], [0, 0, 1, 1], [], []>} : vector<16x16xf32>, vector<16x64xf32>, vector<16x64xf32> -> vector<16x64xf32>
    %32 = arith.addf %26, %31 : vector<16x64xf32>
    %33 = vector.extract_strided_slice %32 {offsets = [0, 0], sizes = [16, 16], strides = [1, 1]} : vector<16x64xf32> to vector<16x16xf32>
    %34 = arith.negf %33 : vector<16x16xf32>
    %35 = math.exp %34 : vector<16x16xf32>
    %cst_20 = arith.constant 1.000000e+00 : f32
    %36 = vector.broadcast %cst_20 : f32 to vector<16x16xf32>
    %37 = arith.addf %36, %35 : vector<16x16xf32>
    %38 = arith.divf %36, %37 : vector<16x16xf32>
    %39 = vector.extract_strided_slice %32 {offsets = [0, 16], sizes = [16, 16], strides = [1, 1]} : vector<16x64xf32> to vector<16x16xf32>
    %40 = arith.negf %39 : vector<16x16xf32>
    %41 = math.exp %40 : vector<16x16xf32>
    %cst_21 = arith.constant 1.000000e+00 : f32
    %42 = vector.broadcast %cst_21 : f32 to vector<16x16xf32>
    %43 = arith.addf %42, %41 : vector<16x16xf32>
    %44 = arith.divf %42, %43 : vector<16x16xf32>
    %45 = vector.extract_strided_slice %32 {offsets = [0, 32], sizes = [16, 16], strides = [1, 1]} : vector<16x64xf32> to vector<16x16xf32>
    %46 = math.tanh %45 : vector<16x16xf32>
    %47 = vector.extract_strided_slice %32 {offsets = [0, 48], sizes = [16, 16], strides = [1, 1]} : vector<16x64xf32> to vector<16x16xf32>
    %48 = arith.negf %47 : vector<16x16xf32>
    %49 = math.exp %48 : vector<16x16xf32>
    %cst_22 = arith.constant 1.000000e+00 : f32
    %50 = vector.broadcast %cst_22 : f32 to vector<16x16xf32>
    %51 = arith.addf %50, %49 : vector<16x16xf32>
    %52 = arith.divf %50, %51 : vector<16x16xf32>
    %53 = arith.mulf %44, %30 : vector<16x16xf32>
    %54 = arith.mulf %38, %46 : vector<16x16xf32>
    %55 = arith.addf %53, %54 : vector<16x16xf32>
    %56 = math.tanh %55 : vector<16x16xf32>
    %57 = arith.mulf %52, %56 : vector<16x16xf32>
    %58 = tpu.concatenate %57, %30 in 1 : vector<16x16xf32>, vector<16x16xf32> -> vector<16x32xf32>
    %cst_23 = arith.constant dense<0.000000e+00> : vector<16x64xf32>
    %59 = tpu.matmul %58, %29, %cst_23 {dimension_numbers = #tpu.dot_dimension_numbers<[1], [0], [0], [1], [0, 0, 1, 1], [], []>} : vector<16x32xf32>, vector<32x64xf32>, vector<16x64xf32> -> vector<16x64xf32>
    %60 = vector.broadcast %22 : vector<1x64xf32> to vector<16x64xf32>
    %61 = arith.addf %59, %60 : vector<16x64xf32>
    %62 = vector.extract_strided_slice %61 {offsets = [0, 0], sizes = [16, 16], strides = [1, 1]} : vector<16x64xf32> to vector<16x16xf32>
    %63 = arith.negf %62 : vector<16x16xf32>
    %64 = math.exp %63 : vector<16x16xf32>
    %cst_24 = arith.constant 1.000000e+00 : f32
    %65 = vector.broadcast %cst_24 : f32 to vector<16x16xf32>
    %66 = arith.addf %65, %64 : vector<16x16xf32>
    %67 = arith.divf %65, %66 : vector<16x16xf32>
    %68 = vector.extract_strided_slice %61 {offsets = [0, 16], sizes = [16, 16], strides = [1, 1]} : vector<16x64xf32> to vector<16x16xf32>
    %69 = arith.negf %68 : vector<16x16xf32>
    %70 = math.exp %69 : vector<16x16xf32>
    %cst_25 = arith.constant 1.000000e+00 : f32
    %71 = vector.broadcast %cst_25 : f32 to vector<16x16xf32>
    %72 = arith.addf %71, %70 : vector<16x16xf32>
    %73 = arith.divf %71, %72 : vector<16x16xf32>
    %74 = vector.extract_strided_slice %61 {offsets = [0, 32], sizes = [16, 16], strides = [1, 1]} : vector<16x64xf32> to vector<16x16xf32>
    %75 = math.tanh %74 : vector<16x16xf32>
    %76 = vector.extract_strided_slice %61 {offsets = [0, 48], sizes = [16, 16], strides = [1, 1]} : vector<16x64xf32> to vector<16x16xf32>
    %77 = arith.negf %76 : vector<16x16xf32>
    %78 = math.exp %77 : vector<16x16xf32>
    %cst_26 = arith.constant 1.000000e+00 : f32
    %79 = vector.broadcast %cst_26 : f32 to vector<16x16xf32>
    %80 = arith.addf %79, %78 : vector<16x16xf32>
    %81 = arith.divf %79, %80 : vector<16x16xf32>
    %82 = arith.mulf %73, %30 : vector<16x16xf32>
    %83 = arith.mulf %67, %75 : vector<16x16xf32>
    %84 = arith.addf %82, %83 : vector<16x16xf32>
    %85 = math.tanh %84 : vector<16x16xf32>
    %86 = arith.mulf %81, %85 : vector<16x16xf32>
    %cst_27 = arith.constant dense<0.000000e+00> : vector<16x64xf32>
    %87 = tpu.matmul %57, %28, %cst_27 {dimension_numbers = #tpu.dot_dimension_numbers<[1], [0], [0], [1], [0, 0, 1, 1], [], []>} : vector<16x16xf32>, vector<16x64xf32>, vector<16x64xf32> -> vector<16x64xf32>
    %88 = arith.addf %26, %87 : vector<16x64xf32>
    %89 = vector.extract_strided_slice %88 {offsets = [0, 0], sizes = [16, 16], strides = [1, 1]} : vector<16x64xf32> to vector<16x16xf32>
    %90 = arith.negf %89 : vector<16x16xf32>
    %91 = math.exp %90 : vector<16x16xf32>
    %cst_28 = arith.constant 1.000000e+00 : f32
    %92 = vector.broadcast %cst_28 : f32 to vector<16x16xf32>
    %93 = arith.addf %92, %91 : vector<16x16xf32>
    %94 = arith.divf %92, %93 : vector<16x16xf32>
    %95 = vector.extract_strided_slice %88 {offsets = [0, 16], sizes = [16, 16], strides = [1, 1]} : vector<16x64xf32> to vector<16x16xf32>
    %96 = arith.negf %95 : vector<16x16xf32>
    %97 = math.exp %96 : vector<16x16xf32>
    %cst_29 = arith.constant 1.000000e+00 : f32
    %98 = vector.broadcast %cst_29 : f32 to vector<16x16xf32>
    %99 = arith.addf %98, %97 : vector<16x16xf32>
    %100 = arith.divf %98, %99 : vector<16x16xf32>
    %101 = vector.extract_strided_slice %88 {offsets = [0, 32], sizes = [16, 16], strides = [1, 1]} : vector<16x64xf32> to vector<16x16xf32>
    %102 = math.tanh %101 : vector<16x16xf32>
    %103 = vector.extract_strided_slice %88 {offsets = [0, 48], sizes = [16, 16], strides = [1, 1]} : vector<16x64xf32> to vector<16x16xf32>
    %104 = arith.negf %103 : vector<16x16xf32>
    %105 = math.exp %104 : vector<16x16xf32>
    %cst_30 = arith.constant 1.000000e+00 : f32
    %106 = vector.broadcast %cst_30 : f32 to vector<16x16xf32>
    %107 = arith.addf %106, %105 : vector<16x16xf32>
    %108 = arith.divf %106, %107 : vector<16x16xf32>
    %109 = arith.mulf %100, %55 : vector<16x16xf32>
    %110 = arith.mulf %94, %102 : vector<16x16xf32>
    %111 = arith.addf %109, %110 : vector<16x16xf32>
    %112 = math.tanh %111 : vector<16x16xf32>
    %113 = arith.mulf %108, %112 : vector<16x16xf32>
    %114 = tpu.concatenate %113, %86 in 1 : vector<16x16xf32>, vector<16x16xf32> -> vector<16x32xf32>
    %cst_31 = arith.constant dense<0.000000e+00> : vector<16x64xf32>
    %115 = tpu.matmul %114, %29, %cst_31 {dimension_numbers = #tpu.dot_dimension_numbers<[1], [0], [0], [1], [0, 0, 1, 1], [], []>} : vector<16x32xf32>, vector<32x64xf32>, vector<16x64xf32> -> vector<16x64xf32>
    %116 = vector.broadcast %22 : vector<1x64xf32> to vector<16x64xf32>
    %117 = arith.addf %115, %116 : vector<16x64xf32>
    %118 = vector.extract_strided_slice %117 {offsets = [0, 0], sizes = [16, 16], strides = [1, 1]} : vector<16x64xf32> to vector<16x16xf32>
    %119 = arith.negf %118 : vector<16x16xf32>
    %120 = math.exp %119 : vector<16x16xf32>
    %cst_32 = arith.constant 1.000000e+00 : f32
    %121 = vector.broadcast %cst_32 : f32 to vector<16x16xf32>
    %122 = arith.addf %121, %120 : vector<16x16xf32>
    %123 = arith.divf %121, %122 : vector<16x16xf32>
    %124 = vector.extract_strided_slice %117 {offsets = [0, 16], sizes = [16, 16], strides = [1, 1]} : vector<16x64xf32> to vector<16x16xf32>
    %125 = arith.negf %124 : vector<16x16xf32>
    %126 = math.exp %125 : vector<16x16xf32>
    %cst_33 = arith.constant 1.000000e+00 : f32
    %127 = vector.broadcast %cst_33 : f32 to vector<16x16xf32>
    %128 = arith.addf %127, %126 : vector<16x16xf32>
    %129 = arith.divf %127, %128 : vector<16x16xf32>
    %130 = vector.extract_strided_slice %117 {offsets = [0, 32], sizes = [16, 16], strides = [1, 1]} : vector<16x64xf32> to vector<16x16xf32>
    %131 = math.tanh %130 : vector<16x16xf32>
    %132 = vector.extract_strided_slice %117 {offsets = [0, 48], sizes = [16, 16], strides = [1, 1]} : vector<16x64xf32> to vector<16x16xf32>
    %133 = arith.negf %132 : vector<16x16xf32>
    %134 = math.exp %133 : vector<16x16xf32>
    %cst_34 = arith.constant 1.000000e+00 : f32
    %135 = vector.broadcast %cst_34 : f32 to vector<16x16xf32>
    %136 = arith.addf %135, %134 : vector<16x16xf32>
    %137 = arith.divf %135, %136 : vector<16x16xf32>
    %138 = arith.mulf %129, %84 : vector<16x16xf32>
    %139 = arith.mulf %123, %131 : vector<16x16xf32>
    %140 = arith.addf %138, %139 : vector<16x16xf32>
    %141 = math.tanh %140 : vector<16x16xf32>
    %142 = arith.mulf %137, %141 : vector<16x16xf32>
    %cst_35 = arith.constant dense<0.000000e+00> : vector<16x64xf32>
    %143 = tpu.matmul %113, %28, %cst_35 {dimension_numbers = #tpu.dot_dimension_numbers<[1], [0], [0], [1], [0, 0, 1, 1], [], []>} : vector<16x16xf32>, vector<16x64xf32>, vector<16x64xf32> -> vector<16x64xf32>
    %144 = arith.addf %26, %143 : vector<16x64xf32>
    %145 = vector.extract_strided_slice %144 {offsets = [0, 0], sizes = [16, 16], strides = [1, 1]} : vector<16x64xf32> to vector<16x16xf32>
    %146 = arith.negf %145 : vector<16x16xf32>
    %147 = math.exp %146 : vector<16x16xf32>
    %cst_36 = arith.constant 1.000000e+00 : f32
    %148 = vector.broadcast %cst_36 : f32 to vector<16x16xf32>
    %149 = arith.addf %148, %147 : vector<16x16xf32>
    %150 = arith.divf %148, %149 : vector<16x16xf32>
    %151 = vector.extract_strided_slice %144 {offsets = [0, 16], sizes = [16, 16], strides = [1, 1]} : vector<16x64xf32> to vector<16x16xf32>
    %152 = arith.negf %151 : vector<16x16xf32>
    %153 = math.exp %152 : vector<16x16xf32>
    %cst_37 = arith.constant 1.000000e+00 : f32
    %154 = vector.broadcast %cst_37 : f32 to vector<16x16xf32>
    %155 = arith.addf %154, %153 : vector<16x16xf32>
    %156 = arith.divf %154, %155 : vector<16x16xf32>
    %157 = vector.extract_strided_slice %144 {offsets = [0, 32], sizes = [16, 16], strides = [1, 1]} : vector<16x64xf32> to vector<16x16xf32>
    %158 = math.tanh %157 : vector<16x16xf32>
    %159 = vector.extract_strided_slice %144 {offsets = [0, 48], sizes = [16, 16], strides = [1, 1]} : vector<16x64xf32> to vector<16x16xf32>
    %160 = arith.negf %159 : vector<16x16xf32>
    %161 = math.exp %160 : vector<16x16xf32>
    %cst_38 = arith.constant 1.000000e+00 : f32
    %162 = vector.broadcast %cst_38 : f32 to vector<16x16xf32>
    %163 = arith.addf %162, %161 : vector<16x16xf32>
    %164 = arith.divf %162, %163 : vector<16x16xf32>
    %165 = arith.mulf %156, %111 : vector<16x16xf32>
    %166 = arith.mulf %150, %158 : vector<16x16xf32>
    %167 = arith.addf %165, %166 : vector<16x16xf32>
    %168 = math.tanh %167 : vector<16x16xf32>
    %169 = arith.mulf %164, %168 : vector<16x16xf32>
    %170 = tpu.concatenate %169, %142 in 1 : vector<16x16xf32>, vector<16x16xf32> -> vector<16x32xf32>
    %cst_39 = arith.constant dense<0.000000e+00> : vector<16x64xf32>
    %171 = tpu.matmul %170, %29, %cst_39 {dimension_numbers = #tpu.dot_dimension_numbers<[1], [0], [0], [1], [0, 0, 1, 1], [], []>} : vector<16x32xf32>, vector<32x64xf32>, vector<16x64xf32> -> vector<16x64xf32>
    %172 = vector.broadcast %22 : vector<1x64xf32> to vector<16x64xf32>
    %173 = arith.addf %171, %172 : vector<16x64xf32>
    %174 = vector.extract_strided_slice %173 {offsets = [0, 0], sizes = [16, 16], strides = [1, 1]} : vector<16x64xf32> to vector<16x16xf32>
    %175 = arith.negf %174 : vector<16x16xf32>
    %176 = math.exp %175 : vector<16x16xf32>
    %cst_40 = arith.constant 1.000000e+00 : f32
    %177 = vector.broadcast %cst_40 : f32 to vector<16x16xf32>
    %178 = arith.addf %177, %176 : vector<16x16xf32>
    %179 = arith.divf %177, %178 : vector<16x16xf32>
    %180 = vector.extract_strided_slice %173 {offsets = [0, 16], sizes = [16, 16], strides = [1, 1]} : vector<16x64xf32> to vector<16x16xf32>
    %181 = arith.negf %180 : vector<16x16xf32>
    %182 = math.exp %181 : vector<16x16xf32>
    %cst_41 = arith.constant 1.000000e+00 : f32
    %183 = vector.broadcast %cst_41 : f32 to vector<16x16xf32>
    %184 = arith.addf %183, %182 : vector<16x16xf32>
    %185 = arith.divf %183, %184 : vector<16x16xf32>
    %186 = vector.extract_strided_slice %173 {offsets = [0, 32], sizes = [16, 16], strides = [1, 1]} : vector<16x64xf32> to vector<16x16xf32>
    %187 = math.tanh %186 : vector<16x16xf32>
    %188 = vector.extract_strided_slice %173 {offsets = [0, 48], sizes = [16, 16], strides = [1, 1]} : vector<16x64xf32> to vector<16x16xf32>
    %189 = arith.negf %188 : vector<16x16xf32>
    %190 = math.exp %189 : vector<16x16xf32>
    %cst_42 = arith.constant 1.000000e+00 : f32
    %191 = vector.broadcast %cst_42 : f32 to vector<16x16xf32>
    %192 = arith.addf %191, %190 : vector<16x16xf32>
    %193 = arith.divf %191, %192 : vector<16x16xf32>
    %194 = arith.mulf %185, %140 : vector<16x16xf32>
    %195 = arith.mulf %179, %187 : vector<16x16xf32>
    %196 = arith.addf %194, %195 : vector<16x16xf32>
    %197 = math.tanh %196 : vector<16x16xf32>
    %198 = arith.mulf %193, %197 : vector<16x16xf32>
    %cst_43 = arith.constant dense<0.000000e+00> : vector<16x64xf32>
    %199 = tpu.matmul %169, %28, %cst_43 {dimension_numbers = #tpu.dot_dimension_numbers<[1], [0], [0], [1], [0, 0, 1, 1], [], []>} : vector<16x16xf32>, vector<16x64xf32>, vector<16x64xf32> -> vector<16x64xf32>
    %200 = arith.addf %26, %199 : vector<16x64xf32>
    %201 = vector.extract_strided_slice %200 {offsets = [0, 0], sizes = [16, 16], strides = [1, 1]} : vector<16x64xf32> to vector<16x16xf32>
    %202 = arith.negf %201 : vector<16x16xf32>
    %203 = math.exp %202 : vector<16x16xf32>
    %cst_44 = arith.constant 1.000000e+00 : f32
    %204 = vector.broadcast %cst_44 : f32 to vector<16x16xf32>
    %205 = arith.addf %204, %203 : vector<16x16xf32>
    %206 = arith.divf %204, %205 : vector<16x16xf32>
    %207 = vector.extract_strided_slice %200 {offsets = [0, 16], sizes = [16, 16], strides = [1, 1]} : vector<16x64xf32> to vector<16x16xf32>
    %208 = arith.negf %207 : vector<16x16xf32>
    %209 = math.exp %208 : vector<16x16xf32>
    %cst_45 = arith.constant 1.000000e+00 : f32
    %210 = vector.broadcast %cst_45 : f32 to vector<16x16xf32>
    %211 = arith.addf %210, %209 : vector<16x16xf32>
    %212 = arith.divf %210, %211 : vector<16x16xf32>
    %213 = vector.extract_strided_slice %200 {offsets = [0, 32], sizes = [16, 16], strides = [1, 1]} : vector<16x64xf32> to vector<16x16xf32>
    %214 = math.tanh %213 : vector<16x16xf32>
    %215 = vector.extract_strided_slice %200 {offsets = [0, 48], sizes = [16, 16], strides = [1, 1]} : vector<16x64xf32> to vector<16x16xf32>
    %216 = arith.negf %215 : vector<16x16xf32>
    %217 = math.exp %216 : vector<16x16xf32>
    %cst_46 = arith.constant 1.000000e+00 : f32
    %218 = vector.broadcast %cst_46 : f32 to vector<16x16xf32>
    %219 = arith.addf %218, %217 : vector<16x16xf32>
    %220 = arith.divf %218, %219 : vector<16x16xf32>
    %221 = arith.mulf %212, %167 : vector<16x16xf32>
    %222 = arith.mulf %206, %214 : vector<16x16xf32>
    %223 = arith.addf %221, %222 : vector<16x16xf32>
    %224 = math.tanh %223 : vector<16x16xf32>
    %225 = arith.mulf %220, %224 : vector<16x16xf32>
    %226 = tpu.concatenate %225, %198 in 1 : vector<16x16xf32>, vector<16x16xf32> -> vector<16x32xf32>
    %cst_47 = arith.constant dense<0.000000e+00> : vector<16x64xf32>
    %227 = tpu.matmul %226, %29, %cst_47 {dimension_numbers = #tpu.dot_dimension_numbers<[1], [0], [0], [1], [0, 0, 1, 1], [], []>} : vector<16x32xf32>, vector<32x64xf32>, vector<16x64xf32> -> vector<16x64xf32>
    %228 = vector.broadcast %22 : vector<1x64xf32> to vector<16x64xf32>
    %229 = arith.addf %227, %228 : vector<16x64xf32>
    %230 = vector.extract_strided_slice %229 {offsets = [0, 0], sizes = [16, 16], strides = [1, 1]} : vector<16x64xf32> to vector<16x16xf32>
    %231 = arith.negf %230 : vector<16x16xf32>
    %232 = math.exp %231 : vector<16x16xf32>
    %cst_48 = arith.constant 1.000000e+00 : f32
    %233 = vector.broadcast %cst_48 : f32 to vector<16x16xf32>
    %234 = arith.addf %233, %232 : vector<16x16xf32>
    %235 = arith.divf %233, %234 : vector<16x16xf32>
    %236 = vector.extract_strided_slice %229 {offsets = [0, 16], sizes = [16, 16], strides = [1, 1]} : vector<16x64xf32> to vector<16x16xf32>
    %237 = arith.negf %236 : vector<16x16xf32>
    %238 = math.exp %237 : vector<16x16xf32>
    %cst_49 = arith.constant 1.000000e+00 : f32
    %239 = vector.broadcast %cst_49 : f32 to vector<16x16xf32>
    %240 = arith.addf %239, %238 : vector<16x16xf32>
    %241 = arith.divf %239, %240 : vector<16x16xf32>
    %242 = vector.extract_strided_slice %229 {offsets = [0, 32], sizes = [16, 16], strides = [1, 1]} : vector<16x64xf32> to vector<16x16xf32>
    %243 = math.tanh %242 : vector<16x16xf32>
    %244 = vector.extract_strided_slice %229 {offsets = [0, 48], sizes = [16, 16], strides = [1, 1]} : vector<16x64xf32> to vector<16x16xf32>
    %245 = arith.negf %244 : vector<16x16xf32>
    %246 = math.exp %245 : vector<16x16xf32>
    %cst_50 = arith.constant 1.000000e+00 : f32
    %247 = vector.broadcast %cst_50 : f32 to vector<16x16xf32>
    %248 = arith.addf %247, %246 : vector<16x16xf32>
    %249 = arith.divf %247, %248 : vector<16x16xf32>
    %250 = arith.mulf %241, %196 : vector<16x16xf32>
    %251 = arith.mulf %235, %243 : vector<16x16xf32>
    %252 = arith.addf %250, %251 : vector<16x16xf32>
    %253 = math.tanh %252 : vector<16x16xf32>
    %254 = arith.mulf %249, %253 : vector<16x16xf32>
    %255 = tpu.concatenate %86, %142, %198, %254 in 0 : vector<16x16xf32>, vector<16x16xf32>, vector<16x16xf32>, vector<16x16xf32> -> vector<64x16xf32>
    %c0_51 = arith.constant 0 : index
    %c0_52 = arith.constant 0 : index
    %256 = vector.load %arg8[%c0_51, %c0_52] : memref<2x16xf32, #tpu.memory_space<vmem>>, vector<2x16xf32>
    %cst_53 = arith.constant dense<0.000000e+00> : vector<2x64xf32>
    %257 = tpu.matmul %256, %255, %cst_53 {dimension_numbers = #tpu.dot_dimension_numbers<[1], [1], [0], [0], [0, 0, 1, 0], [], []>} : vector<2x16xf32>, vector<64x16xf32>, vector<2x64xf32> -> vector<2x64xf32>
    %c0_54 = arith.constant 0 : index
    %c0_55 = arith.constant 0 : index
    %258 = vector.load %arg9[%c0_54, %c0_55] : memref<2x1xf32, #tpu.memory_space<vmem>>, vector<2x1xf32>
    %259 = vector.broadcast %258 : vector<2x1xf32> to vector<2x64xf32>
    %260 = arith.addf %257, %259 : vector<2x64xf32>
    %c0_56 = arith.constant 0 : index
    %c0_57 = arith.constant 0 : index
    %c0_58 = arith.constant 0 : index
    %261 = vector.load %arg10[%c0_56, %c0_57, %c0_58] : memref<1x2x64xf32, #tpu.memory_space<vmem>>, vector<1x2x64xf32>
    %262 = vector.shape_cast %261 : vector<1x2x64xf32> to vector<2x64xf32>
    %263 = vector.shape_cast %260 : vector<2x64xf32> to vector<1x2x64xf32>
    tpu.vector_store %arg10[%c0_56, %c0_57, %c0_58], %263 {strides = array<i32>} : memref<1x2x64xf32, #tpu.memory_space<vmem>>, vector<1x2x64xf32>,
    return
  }
  func.func @transform_0(%arg0: i32) -> (i32, i32, i32) {
    %c0_i32 = arith.constant 0 : i32
    %c0_i32_0 = arith.constant 0 : i32
    %c0_i32_1 = arith.constant 0 : i32
    return %arg0, %c0_i32, %c0_i32_0 : i32, i32, i32
  }
  func.func @transform_1(%arg0: i32) -> (i32, i32) {
    %c0_i32 = arith.constant 0 : i32
    %c0_i32_0 = arith.constant 0 : i32
    %c0_i32_1 = arith.constant 0 : i32
    return %c0_i32, %c0_i32_0 : i32, i32
  }
  func.func @transform_2(%arg0: i32) -> (i32, i32) {
    %c0_i32 = arith.constant 0 : i32
    %c0_i32_0 = arith.constant 0 : i32
    %c0_i32_1 = arith.constant 0 : i32
    return %c0_i32, %c0_i32_0 : i32, i32
  }
  func.func @transform_3(%arg0: i32) -> (i32, i32) {
    %c0_i32 = arith.constant 0 : i32
    %c0_i32_0 = arith.constant 0 : i32
    %c0_i32_1 = arith.constant 0 : i32
    return %c0_i32, %c0_i32_0 : i32, i32
  }
  func.func @transform_4(%arg0: i32) -> (i32, i32) {
    %c0_i32 = arith.constant 0 : i32
    %c0_i32_0 = arith.constant 0 : i32
    %c0_i32_1 = arith.constant 0 : i32
    return %c0_i32, %c0_i32_0 : i32, i32
  }
  func.func @transform_5(%arg0: i32) -> (i32, i32) {
    %c0_i32 = arith.constant 0 : i32
    %c0_i32_0 = arith.constant 0 : i32
    %c0_i32_1 = arith.constant 0 : i32
    return %c0_i32, %c0_i32_0 : i32, i32
  }
  func.func @transform_6(%arg0: i32) -> (i32, i32) {
    %c0_i32 = arith.constant 0 : i32
    %c0_i32_0 = arith.constant 0 : i32
    %c0_i32_1 = arith.constant 0 : i32
    return %c0_i32, %c0_i32_0 : i32, i32
  }
  func.func @transform_7(%arg0: i32) -> (i32, i32) {
    %c0_i32 = arith.constant 0 : i32
    %c0_i32_0 = arith.constant 0 : i32
    %c0_i32_1 = arith.constant 0 : i32
    return %c0_i32, %c0_i32_0 : i32, i32
  }
  func.func @transform_8(%arg0: i32) -> (i32, i32) {
    %c0_i32 = arith.constant 0 : i32
    %c0_i32_0 = arith.constant 0 : i32
    %c0_i32_1 = arith.constant 0 : i32
    return %c0_i32, %c0_i32_0 : i32, i32
  }
  func.func @transform_9(%arg0: i32) -> (i32, i32, i32) {
    %c0_i32 = arith.constant 0 : i32
    %c0_i32_0 = arith.constant 0 : i32
    %c0_i32_1 = arith.constant 0 : i32
    return %arg0, %c0_i32, %c0_i32_0 : i32, i32, i32
  }
}

</mosaic_0001>

<bundles_post_ra>
// kernel: tpu_custom_call.1
= control target key start
LH: loop header
LB: loop body
LE: loop exit
PB: predicated region body
PF: predicated region fallthrough
CT: control target
= control target key end

     0   :  { %14 = vsyncpa [#allocation3], 0  ;;  %s3078_s0 = inlined_call_operand.vmem [shape: f32[2,16,32], index: 0, kind: input, shape index: {}]   ;;  %s3079_s1 = inlined_call_operand.vmem [shape: f32[16,16], index: 1, kind: input, shape index: {}]   ;;  %s3080_s2 = inlined_call_operand.vmem [shape: f32[32,256], index: 2, kind: input, shape index: {}]   ;;  %s3081_s3 = inlined_call_operand.vmem [shape: f32[1,256], index: 3, kind: input, shape index: {}]   ;;  %s3082_s4 = inlined_call_operand.vmem [shape: f32[128,64], index: 4, kind: input, shape index: {}]   ;;  %s3083_s5 = inlined_call_operand.vmem [shape: f32[48,64], index: 5, kind: input, shape index: {}]   ;;  %s3084_s6 = inlined_call_operand.vmem [shape: f32[1,128], index: 6, kind: input, shape index: {}]   ;;  %s3085_s7 = inlined_call_operand.vmem [shape: f32[2,16], index: 7, kind: input, shape index: {}]   ;;  %s3086_s8 = inlined_call_operand.vmem [shape: f32[2,1], index: 8, kind: input, shape index: {}]   ;;  %s3087_s9 = inlined_call_operand.hbm [shape: f32[2,2,64], index: 9, kind: output, shape index: {}]  }
   0x1   :  { %16 = vsyncpa [#allocation3 + $0x1], 0  ;;  %s2625_s30 = smov 0   ;;  %s2627_s10 = smov 0  }
   0x2   :  { %s2629_s11 = smov 0   ;;  %s2631_s12 = smov 0  }
   0x3 LB: > { %s2646_s13 = sadd.s32 4294967295, %s2563_s12   ;;  %s1932_s14 = sadd.s32 4294967294, %s2563_s12   ;;  %s2563_s12 = sphi %s2631_s12, %s3095_s12   ;;  %s2559_s11 = sphi %s2629_s11, %s3094_s11   ;;  %s2555_s10 = sphi %s2627_s10, %s3093_s10   ;;  %s2551_s30 = sphi %s2625_s30, %s3092_s30  }
   0x4   : > { %s2650_s15 = sadd.s32 1, %s2563_s12   ;;  %s223_s16 = sadd.s32 1, %s2559_s11 }
   0x5   : > { %s220_s17 = ssub.s32 %s2563_s12, %s2650_s15  ;;  %p233_p0 = scmp.ne.s32.totalorder %s2559_s11, %s2555_s10 }
   0x6   : > { %p221_p1 = scmp.eq.s32.totalorder %s220_s17, 0  ;;  %p234_p2 = scmp.eq.s32.totalorder %s2646_s13, 1 }
   0x7   : > { %p239_p3 = scmp.ne.s32.totalorder %s2555_s10, %s2551_s30  ;;  %p240_p4 = scmp.eq.s32.totalorder %s1932_s14, 1 }
   0x8   : > { %s2661_s18 = scalar_select %p221_p1, %s2559_s11, %s223_s16  }
   0x9   : > { %p2663_p5 = por %p234_p2, %p233_p0  ;;  %p2667_p6 = por %p240_p4, %p239_p3 }
   0xa   : > { %p1935_p7 = scmp.ge.s32.totalorder %s2563_s12, 1  ;;  %p290_p8 = scmp.lt.s32.totalorder %s2563_s12, 3 }
   0xc   : > { %p291_p9 = pnand %p1935_p7, %p290_p8 }
   0xd   : > { %v334_v0 = vld [vmem:[%s3080_s2 + $0x8] sm:$0xff] (!%p291_p9)  ;;  %v336_v1 = vld [vmem:[%s3080_s2 + $0x18] sm:$0xff] (!%p291_p9)  ;;  %v333_v2 = vld [vmem:[%s3080_s2] sm:$0xff] (!%p291_p9)  ;;  %p326_p10 = scmp.lt.s32.totalorder (!%p291_p9), %s2646_s13, 1  ;;  %v2565_v7 = vmov (!%p291_p9), 0.0   ;;  %vm341_vm0 = vcmask (!%p291_p9), 261120   ;;  %v429_v50 = vlaneseq (!%p291_p9) }
   0xe   : > { %294 = sbr.rel (%p291_p9) target bundleno = 4288 (0x10c0), region = 56  ;;  %v2183_v3 = vpack.c.bf16 (!%p291_p9), %v336_v1, %v334_v0  ;;  %v335_v4 = vld [vmem:[%s3080_s2 + $0x10] sm:$0xff] (!%p291_p9)  ;;  %v338_v5 = vld [vmem:[%s3080_s2 + $0x28] sm:$0xff] (!%p291_p9)  ;;  %v340_v6 = vld [vmem:[%s3080_s2 + $0x38] sm:$0xff] (!%p291_p9)  ;;  %412 = vmatprep.mubr.f32.mxu0 (!%p291_p9), %v2565_v7  ;;  %510 = vmatprep.mubr.f32.mxu1 (!%p291_p9), %v2565_v7  ;;  %vm439_vm1 = vcmask (!%p291_p9), 130048   ;;  %s2567_s27 = smov (!%p291_p9), 16  }
   0xf   : > { %v2185_v8 = vpack.c.bf16 (!%p291_p9), %v335_v4, %v333_v2  ;;  %v2187_v9 = vpack.c.bf16 (!%p291_p9), %v340_v6, %v338_v5  ;;  %v337_v10 = vld [vmem:[%s3080_s2 + $0x20] sm:$0xff] (!%p291_p9)  ;;  %v339_v11 = vld [vmem:[%s3080_s2 + $0x30] sm:$0xff] (!%p291_p9)  ;;  %v426_v22 = vld [vmem:[%s3079_s1 + $0x8] sm:$0xff] (!%p291_p9)  ;;  %v430_v51 = vshrl.u32 (!%p291_p9), %v429_v50, 7  ;;  %s2568_s17 = smov (!%p291_p9), 32   ;;  %s2570_s28 = smov (!%p291_p9), 64  }
  0x10   : > { %2184 = vmatprep.subr.bf16.mxu0 (!%p291_p9), %v2183_v3  ;;  %v2189_v12 = vpack.c.bf16 (!%p291_p9), %v339_v11, %v337_v10  ;;  %v425_v21 = vld [vmem:[%s3079_s1] sm:$0xff] (!%p291_p9)  ;;  %v543_v24 = vld [vmem:[%s3082_s4 + $0x8] sm:$0xff] (!%p291_p9)  ;;  %v544_v26 = vld [vmem:[%s3082_s4 + $0x10] sm:$0xff] (!%p291_p9)  ;;  %vm2572_vm2 = vmmov (!%p291_p9), 0   ;;  %s323_s16 = sand.u32 (!%p291_p9), 1, %s2555_s10   ;;  %s1986_s21 = sshll.u32 (!%p291_p9), %s2646_s13, 5 }
  0x11   : > { %2186 = vmatpush1.bf16.msra.mxu0 (!%p291_p9), %v2185_v8  ;;  %v542_v23 = vld [vmem:[%s3082_s4] sm:$0xff] (!%p291_p9)  ;;  %v545_v27 = vld [vmem:[%s3082_s4 + $0x18] sm:$0xff] (!%p291_p9)  ;;  %v547_v30 = vld [vmem:[%s3082_s4 + $0x28] sm:$0xff] (!%p291_p9)  ;;  %v431_v52 = vsub.s32 (!%p291_p9), 0, %v430_v51  ;;  %v435_v63 = vsub.s32 (!%p291_p9), 1, %v430_v51  ;;  %vm1857_vm4 = vcmask (!%p291_p9), 517120  }
  0x12   : > { %2188 = vmatprep.subr.bf16.mxu0 (!%p291_p9), %v2187_v9  ;;  %v2195_v25 = vpack.c.bf16 (!%p291_p9), %v543_v24, %v542_v23  ;;  %v2199_v28 = vpack.c.bf16 (!%p291_p9), %v545_v27, %v544_v26  ;;  %v546_v29 = vld [vmem:[%s3082_s4 + $0x20] sm:$0xff] (!%p291_p9)  ;;  %v548_v32 = vld [vmem:[%s3082_s4 + $0x30] sm:$0xff] (!%p291_p9)  ;;  %v549_v33 = vld [vmem:[%s3082_s4 + $0x38] sm:$0xff] (!%p291_p9) }
  0x13   : > { %v2203_v31 = vpack.c.bf16 (!%p291_p9), %v547_v30, %v546_v29  ;;  %v2207_v34 = vpack.c.bf16 (!%p291_p9), %v549_v33, %v548_v32  ;;  %v550_v35 = vld [vmem:[%s3082_s4 + $0x40] sm:$0xff] (!%p291_p9)  ;;  %v551_v36 = vld [vmem:[%s3082_s4 + $0x48] sm:$0xff] (!%p291_p9)  ;;  %v552_v38 = vld [vmem:[%s3082_s4 + $0x50] sm:$0xff] (!%p291_p9) }
  0x14   : > { %v2211_v37 = vpack.c.bf16 (!%p291_p9), %v551_v36, %v550_v35  ;;  %v553_v39 = vld [vmem:[%s3082_s4 + $0x58] sm:$0xff] (!%p291_p9)  ;;  %v554_v41 = vld [vmem:[%s3082_s4 + $0x60] sm:$0xff] (!%p291_p9)  ;;  %v555_v42 = vld [vmem:[%s3082_s4 + $0x68] sm:$0xff] (!%p291_p9) }
  0x15   : > { %s327_s25 = scalar_select %p326_p10, %s2646_s13, 1  ;;  %2190 = vmatpush1.bf16.msra.mxu0 %v2189_v12  ;;  %v2215_v40 = vpack.c.bf16 %v553_v39, %v552_v38  ;;  %v2219_v43 = vpack.c.bf16 %v555_v42, %v554_v41  ;;  %v556_v44 = vld [vmem:[%s3082_s4 + $0x70] sm:$0xff]  ;;  %v557_v45 = vld [vmem:[%s3082_s4 + $0x78] sm:$0xff]  ;;  %v639_v46 = vld [vmem:[%s3083_s5] sm:$0xff] }
  0x16   : > { %v640_v47 = vld [vmem:[%s3083_s5 + $0x8] sm:$0xff]  ;;  %v2223_v48 = vpack.c.bf16 %v557_v45, %v556_v44  ;;  %v427_v53 = vld [vmem:[%s3081_s3] sm:$0x3]  ;;  %v641_v45 = vld [vmem:[%s3083_s5 + $0x10] sm:$0xff]  ;;  %s2574_s13 = smov [#allocation2]  }
  0x17   : > { %s1989_s26 = sshll.u32 %s327_s25, 4  ;;  %v2771_v49 = vpack.c.bf16 %v640_v47, %v639_v46  ;;  %v432_v54 = vrot.slane %v427_v53, %v431_v52  ;;  %v436_v0 = vrot.slane %v427_v53, %v435_v63  ;;  %v642_v46 = vld [vmem:[%s3083_s5 + $0x18] sm:$0xff]  ;;  %v643_v51 = vld [vmem:[%s3083_s5 + $0x20] sm:$0xff]  ;;  %v644_v52 = vld [vmem:[%s3083_s5 + $0x28] sm:$0xff]  ;;  %s2569_s25 = smov 80  }
  0x18   : > { %s330_s29 = scalar_lea.vmem %s3078_s0, %s1989_s26  ;;  %s2566_s26 = smov 96   ;;  %v2808_v47 = vpack.c.bf16 %v642_v46, %v641_v45  ;;  %v2820_v53 = vpack.c.bf16 %v644_v52, %v643_v51  ;;  %vm3015_vm3 = vmpackc.low %vm439_vm1, %vm439_vm1 }
  0x19   : > { %v331_v13 = vld [vmem:[%s330_s29] sm:$0xff]  ;;  %v332_v14 = vld [vmem:[%s330_s29 + $0x8] sm:$0xff]  ;;  %2228 = vmatprep.subr.bf16.mxu0 %v2771_v49  ;;  %s2505_s29 = sshll.u32 %s2574_s13, 4  ;;  %s2506_s29 = int_to_ptr.vmem [resolvable:$false] %s2505_s29 }
  0x1a   : > { %1939 = vmatmul.mubr.msk.f32.vlgmr.msra.gmra.mrb[0].mxu0 %vm341_vm0, %v331_v13  ;;  %s2507_s14 = scalar_lea.vmem %s2506_s29, 64 }
  0x1b   : > { %418 = vmatprep.mubr.f32.mxu0 %v2565_v7  ;;  %2230 = vmatpush3.bf16.msra.mxu0 %v2771_v49 }
  0x1c   : > { %2232 = vmatprep.subr.bf16.mxu0 %v2808_v47 }
  0x1e   : > { %1940 = vmatmul.mubr.msk.f32.gmra.mrb[2].mxu0 %vm341_vm0, %v332_v14 }
  0x1f   : > { %2096 = vmatprep.mubr.f32.mxu0 %v2565_v7 }
  0x22   : > { %2097 = vmatmul.mubr.f32.vlgmr.msra.gmra.mrb[4].mxu0 %v2565_v7 }
  0x23   : > { %2234 = vmatpush3.bf16.msra.mxu0 %v2808_v47 }
  0x24   : > { %2236 = vmatprep.subr.bf16.mxu0 %v2820_v53 }
  0x27   : > { %2238 = vmatpush3.bf16.msra.mxu0 %v2820_v53 }
  0x28   : > { %2240 = vmatprep.subr.bf16.mxu0 %v2771_v49 }
  0xed   : > { %v414_v15 = vpop.f32.mrb[0].mxu0 }
  0xee   : > { %v416_v16 = vpop.f32.mrb[1].mxu0 }
  0xf1   : > { %v420_v17 = vpop.f32.mrb[2].mxu0 }
  0xf2   : > { %v2193_v18 = vpack.c.bf16 %v420_v17, %v414_v15  ;;  %v422_v19 = vpop.f32.mrb[3].mxu0 }
  0xf3   : > { %v2191_v20 = vpack.c.bf16 %v422_v19, %v416_v16 }
  0xf5   : > { %2192 = vmatprep.subr.bf16.mxu1 %v2191_v20  ;;  %v2098_v16 = vpop.f32.mrb[4].mxu0 }
  0xf6   : > { %2194 = vmatpush1.bf16.msra.mxu1 %v2193_v18  ;;  %v714_v17 = vpop.f32.mrb[5].mxu0  ;;  %v2782_v18 = vld [vmem:[%s3084_s6] ss:$0 sm:$0xff] }
  0xf7   : > { %2196 = vmatprep.subr.bf16.mxu1 %v2195_v25 }
  0xf9   : > { %1941 = vmatmul.mubr.msk.f32.vlgmr.msra.gmra.mrb[0].mxu1 %vm439_vm1, %v425_v21 }
  0xfa   : > { %516 = vmatprep.mubr.f32.mxu1 %v2565_v7  ;;  %2198 = vmatpush3.bf16.msra.mxu1 %v2195_v25 }
  0xfb   : > { %2200 = vmatprep.subr.bf16.mxu1 %v2199_v28 }
  0xfd   : > { %1942 = vmatmul.mubr.msk.f32.gmra.mrb[2].mxu1 %vm439_vm1, %v426_v22 }
  0xfe   : > { %2202 = vmatpush3.bf16.msra.mxu1 %v2199_v28 }
  0xff   : > { %2204 = vmatprep.subr.bf16.mxu1 %v2203_v31 }
 0x102   : > { %2206 = vmatpush3.bf16.msra.mxu1 %v2203_v31 }
 0x103   : > { %2208 = vmatprep.subr.bf16.mxu1 %v2207_v34 }
 0x106   : > { %2210 = vmatpush3.bf16.msra.mxu1 %v2207_v34 }
 0x107   : > { %2212 = vmatprep.subr.bf16.mxu1 %v2211_v37 }
 0x10a   : > { %2214 = vmatpush3.bf16.msra.mxu1 %v2211_v37 }
 0x10b   : > { %2216 = vmatprep.subr.bf16.mxu1 %v2215_v40 }
 0x10e   : > { %2218 = vmatpush3.bf16.msra.mxu1 %v2215_v40 }
 0x10f   : > { %2220 = vmatprep.subr.bf16.mxu1 %v2219_v43 }
 0x112   : > { %2222 = vmatpush3.bf16.msra.mxu1 %v2219_v43 }
 0x113   : > { %2224 = vmatprep.subr.bf16.mxu1 %v2223_v48 }
 0x116   : > { %2226 = vmatpush3.bf16.msra.mxu1 %v2223_v48 }
 0x1cc   : > { %v512_v55 = vpop.f32.mrb[0].mxu1 }
 0x1cd   : > { %v513_v56 = vadd.f32 %v512_v55, %v432_v54  ;;  %v514_v57 = vpop.f32.mrb[1].mxu1 }
 0x1ce   : > { %v515_v3 = vadd.f32 %v514_v57, %v436_v0 }
 0x1cf   : > { %v1943_v58 = vmul.f32 -1.442695, %v513_v56 }
 0x1d0   : > { %v518_v59 = vpop.f32.mrb[2].mxu1 }
 0x1d1   : > { %2361 = vpow2.f32 %v1943_v58  ;;  %v519_v60 = vadd.f32 %v518_v59, %v432_v54  ;;  %v520_v61 = vpop.f32.mrb[3].mxu1 }
 0x1d2   : > { %v521_v6 = vadd.f32 %v520_v61, %v436_v0 }
 0x1d3   : > { %v1944_v62 = vmul.f32 -1.442695, %v519_v60 }
 0x1d5   : > { %2363 = vpow2.f32 %v1944_v62 }
 0x1db   : > { %v2362_v1 = vpop.eup %2361 }
 0x1dc   : > { %v529_v2 = vadd.f32 1.0, %v2362_v1 }
 0x1de   : > { %2365 = vrcp.f32 %v529_v2 }
 0x1df   : > { %v2364_v4 = vpop.eup %2363  ;;  %2367 = vtanh.f32 %v515_v3 }
 0x1e0   : > { %v530_v5 = vadd.f32 1.0, %v2364_v4 }
 0x1e2   : > { %2369 = vrcp.f32 %v530_v5 }
 0x1e3   : > { %2371 = vtanh.f32 %v521_v6 }
 0x1e8   : > { %v2366_v8 = vpop.eup %2365 }
 0x1e9   : > { %v537_v9 = vsub.f32 1.0, %v2366_v8  ;;  %v2368_v10 = vpop.eup %2367 }
 0x1eb   : > { %v539_v11 = vmul.f32 %v2368_v10, %v537_v9 }
 0x1ec   : > { %v2370_v12 = vpop.eup %2369 }
 0x1ed   : > { %v538_v13 = vsub.f32 1.0, %v2370_v12  ;;  %2089 = vmatprep.mubr.f32.mxu1 %v539_v11  ;;  %v2372_v14 = vpop.eup %2371 }
 0x1ef   : > { %v540_v15 = vmul.f32 %v2372_v14, %v538_v13 }
 0x1f1   : > { %2090 = vmatmul.mubr.f32.vlgmr.msra.gmra.mrb[4].mxu1 %v540_v15 }
 0x1f2   : > { %2180 = vmatprep.mubr.msk.f32.mxu1 %vm2572_vm2, %v2565_v7 }
 0x2c4   : > { %v2091_v19 = vpop.f32.mrb[4].mxu1 }
 0x2c5   : > { %v630_v20 = vpop.f32.mrb[5].mxu1  ;;  %v2785_v21 = vadd.f32 %v2091_v19, %v2782_v18 }
 0x2c6   : > { %v2788_v22 = vadd.f32 %v2782_v18, %v630_v20 }
 0x2c7   : > { %v724_v24 = vadd.f32 %v2098_v16, %v2785_v21 }
 0x2c8   : > { %v723_v23 = vadd.f32 %v714_v17, %v2788_v22 }
 0x2c9   : > { %v1947_v28 = vmul.f32 -1.442695, %v724_v24 }
 0x2ca   : > { %2373 = vtanh.f32 %v723_v23  ;;  %v1946_v27 = vmul.f32 -1.442695, %v723_v23 }
 0x2cb   : > { %2375 = vtanh.f32 %v724_v24 }
 0x2cc   : > { %2377 = vpow2.f32 %v1946_v27 }
 0x2cd   : > { %2379 = vpow2.f32 %v1947_v28 }
 0x2d4   : > { %v2374_v25 = vpop.eup %2373 }
 0x2d5   : > { %743 = vrot.lane.b32.xlu0 %v2374_v25, %s2566_s26  ;;  %v2376_v26 = vpop.eup %2375 }
 0x2d6   : > { %v2378_v29 = vpop.eup %2377 }
 0x2d7   : > { %v731_v30 = vadd.f32 1.0, %v2378_v29  ;;  %v2380_v31 = vpop.eup %2379 }
 0x2d8   : > { %v732_v32 = vadd.f32 1.0, %v2380_v31 }
 0x2d9   : > { %745 = vrot.lane.b32.xlu0 %v2376_v26, %s2566_s26  ;;  %2381 = vrcp.f32 %v731_v30 }
 0x2da   : > { %2383 = vrcp.f32 %v732_v32 }
 0x2e3   : > { %v2382_v33 = vpop.eup %2381 }
 0x2e4   : > { %v2384_v36 = vpop.eup %2383  ;;  %v739_v39 = vmul.f32 0.0, %v2382_v33 }
 0x2e5   : > { %v740_v42 = vmul.f32 0.0, %v2384_v36 }
 0x347   : > { %v744_v34 = vpop.permute.xlu0 %743 }
 0x348   : > { %v749_v35 = vmul.f32 %v2382_v33, %v744_v34 }
 0x34a   : > { %753 = vrot.lane.b32.xlu1 %v749_v35, %s2567_s27 }
 0x34b   : > { %v746_v37 = vpop.permute.xlu0 %745 }
 0x34c   : > { %v750_v38 = vmul.f32 %v2384_v36, %v746_v37 }
 0x34e   : > { %755 = vrot.lane.b32.xlu1 %v750_v38, %s2567_s27 }
 0x3bc   : > { %v754_v40 = vpop.permute.xlu1 %753 }
 0x3bd   : > { %v2796_v41 = vadd.f32 %v754_v40, %v739_v39 }
 0x3bf   : > { %2385 = vtanh.f32 %v2796_v41 }
 0x3c0   : > { %v756_v43 = vpop.permute.xlu1 %755 }
 0x3c1   : > { %v2799_v44 = vadd.f32 %v756_v43, %v740_v42 }
 0x3c3   : > { %2387 = vtanh.f32 %v2799_v44 }
 0x3c9   : > { %v2386_v48 = vpop.eup %2385 }
 0x3ca   : > { %765 = vrot.lane.b32.xlu0 %v2386_v48, %s2568_s17 }
 0x3cd   : > { %v2388_v50 = vpop.eup %2387 }
 0x3ce   : > { %767 = vrot.lane.b32.xlu1 %v2388_v50, %s2568_s17 }
 0x43c   : > { %v766_v54 = vpop.permute.xlu0 %765 }
 0x43d   : > { %v771_v55 = vmul.f32 %v2382_v33, %v766_v54 }
 0x43f   : > { %775 = vrot.lane.b32.xlu0 %v771_v55, %s2569_s25 }
 0x440   : > { %v768_v56 = vpop.permute.xlu1 %767 }
 0x441   : > { %v772_v57 = vmul.f32 %v2384_v36, %v768_v56 }
 0x443   : > { %777 = vrot.lane.b32.xlu1 %v772_v57, %s2569_s25  ;;  %783 = vrot.lane.b32.xlu0 %v2782_v18, %s2570_s28  ;;  %s3036_s28 = scalar_lea.hbm %s3087_s9, %s1986_s21 }
 0x4b1   : > { %v776_v58 = vpop.permute.xlu0 %775 }
 0x4b2   : > { %v781_v59 = vsel %vm439_vm1, %v776_v58, 0.0 }
 0x4b3   : > { %2107 = vmatprep.mubr.msk.f32.mxu0 %vm341_vm0, %v781_v59 }
 0x4b5   : > { %v778_v60 = vpop.permute.xlu1 %777  ;;  %v2840_v62 = vpop.permute.xlu0 %783 }
 0x4b6   : > { %v782_v61 = vsel %vm439_vm1, %v778_v60, 0.0 }
 0x4b7   : > { %2108 = vmatmul.mubr.msk.f32.vlgmr.msra.gmra.mrb[6].mxu0 %vm341_vm0, %v782_v61 }
 0x4b8   : > { %2242 = vmatpush3.bf16.msra.mxu0 %v2771_v49  ;;  %2114 = vmatprep.mubr.msk.f32.mxu0 %vm439_vm1, %v776_v58 }
 0x4b9   : > { %2244 = vmatprep.subr.bf16.mxu0 %v2808_v47 }
 0x4bb   : > { %2115 = vmatmul.mubr.msk.f32.vlgmr.msra.gmra.mrb[8].mxu0 %vm439_vm1, %v778_v60 }
 0x4bc   : > { %2246 = vmatpush3.bf16.msra.mxu0 %v2808_v47 }
 0x4bd   : > { %2248 = vmatprep.subr.bf16.mxu0 %v2820_v53 }
 0x4c0   : > { %2250 = vmatpush3.bf16.msra.mxu0 %v2820_v53 }
 0x4c1   : > { %2252 = vmatprep.subr.bf16.mxu0 %v2771_v49 }
 0x58a   : > { %v2109_v63 = vpop.f32.mrb[6].mxu0 }
 0x58b   : > { %v858_v0 = vpop.f32.mrb[7].mxu0  ;;  %v864_v2 = vadd.f32 %v2109_v63, %v2840_v62 }
 0x58c   : > { %v859_v1 = vadd.f32 %v858_v0, %v2840_v62 }
 0x58d   : > { %v1951_v13 = vmul.f32 -1.442695, %v864_v2 }
 0x58e   : > { %2389 = vtanh.f32 %v859_v1  ;;  %v2116_v3 = vpop.f32.mrb[8].mxu0  ;;  %v1950_v12 = vmul.f32 -1.442695, %v859_v1 }
 0x58f   : > { %v985_v4 = vpop.f32.mrb[9].mxu0  ;;  %2391 = vtanh.f32 %v864_v2  ;;  %v995_v6 = vadd.f32 %v2116_v3, %v2785_v21 }
 0x590   : > { %v994_v5 = vadd.f32 %v985_v4, %v2788_v22 }
 0x591   : > { %v1955_v15 = vmul.f32 -1.442695, %v995_v6 }
 0x592   : > { %2393 = vtanh.f32 %v994_v5  ;;  %v1954_v14 = vmul.f32 -1.442695, %v994_v5 }
 0x593   : > { %2395 = vtanh.f32 %v995_v6 }
 0x594   : > { %2397 = vpow2.f32 %v1950_v12 }
 0x595   : > { %2399 = vpow2.f32 %v1951_v13 }
 0x596   : > { %2401 = vpow2.f32 %v1954_v14 }
 0x597   : > { %2403 = vpow2.f32 %v1955_v15 }
 0x598   : > { %v2390_v8 = vpop.eup %2389 }
 0x599   : > { %885 = vrot.lane.b32.xlu1 %v2390_v8, %s2566_s26  ;;  %v2392_v9 = vpop.eup %2391 }
 0x59c   : > { %v2394_v10 = vpop.eup %2393 }
 0x59d   : > { %1014 = vrot.lane.b32.xlu0 %v2394_v10, %s2566_s26  ;;  %887 = vrot.lane.b32.xlu1 %v2392_v9, %s2566_s26  ;;  %v2396_v11 = vpop.eup %2395 }
 0x59e   : > { %v2398_v16 = vpop.eup %2397 }
 0x59f   : > { %v2400_v17 = vpop.eup %2399  ;;  %v873_v18 = vadd.f32 1.0, %v2398_v16 }
 0x5a0   : > { %v2402_v19 = vpop.eup %2401  ;;  %v874_v20 = vadd.f32 1.0, %v2400_v17 }
 0x5a1   : > { %1016 = vrot.lane.b32.xlu0 %v2396_v11, %s2566_s26  ;;  %2405 = vrcp.f32 %v873_v18  ;;  %v1002_v23 = vadd.f32 1.0, %v2402_v19  ;;  %v2404_v24 = vpop.eup %2403 }
 0x5a2   : > { %2407 = vrcp.f32 %v874_v20  ;;  %v1003_v25 = vadd.f32 1.0, %v2404_v24 }
 0x5a3   : > { %2409 = vrcp.f32 %v1002_v23 }
 0x5a4   : > { %2411 = vrcp.f32 %v1003_v25 }
 0x5ab   : > { %v2406_v26 = vpop.eup %2405 }
 0x5ac   : > { %v2408_v29 = vpop.eup %2407  ;;  %v881_v38 = vmul.f32 0.0, %v2406_v26 }
 0x5ad   : > { %v2410_v30 = vpop.eup %2409  ;;  %v882_v42 = vmul.f32 0.0, %v2408_v29 }
 0x5ae   : > { %v2412_v35 = vpop.eup %2411  ;;  %v1010_v43 = vmul.f32 %v2410_v30, %v2796_v41 }
 0x5af   : > { %v1011_v51 = vmul.f32 %v2412_v35, %v2799_v44 }
 0x60b   : > { %v886_v27 = vpop.permute.xlu1 %885 }
 0x60c   : > { %v891_v28 = vmul.f32 %v2406_v26, %v886_v27 }
 0x60e   : > { %895 = vrot.lane.b32.xlu1 %v891_v28, %s2567_s27 }
 0x60f   : > { %v888_v31 = vpop.permute.xlu1 %887  ;;  %v1015_v32 = vpop.permute.xlu0 %1014 }
 0x610   : > { %v892_v33 = vmul.f32 %v2408_v29, %v888_v31  ;;  %v1020_v34 = vmul.f32 %v2410_v30, %v1015_v32 }
 0x612   : > { %897 = vrot.lane.b32.xlu1 %v892_v33, %s2567_s27  ;;  %1024 = vrot.lane.b32.xlu0 %v1020_v34, %s2567_s27 }
 0x613   : > { %v1017_v36 = vpop.permute.xlu0 %1016 }
 0x614   : > { %v1021_v37 = vmul.f32 %v2412_v35, %v1017_v36 }
 0x616   : > { %1026 = vrot.lane.b32.xlu0 %v1021_v37, %s2567_s27 }
 0x680   : > { %v896_v39 = vpop.permute.xlu1 %895 }
 0x681   : > { %v2854_v40 = vadd.f32 %v896_v39, %v881_v38 }
 0x683   : > { %2413 = vtanh.f32 %v2854_v40 }
 0x684   : > { %v898_v45 = vpop.permute.xlu1 %897  ;;  %v1025_v46 = vpop.permute.xlu0 %1024 }
 0x685   : > { %v2858_v48 = vadd.f32 %v898_v45, %v882_v42  ;;  %v2860_v50 = vadd.f32 %v1025_v46, %v1010_v43 }
 0x687   : > { %2415 = vtanh.f32 %v2858_v48 }
 0x688   : > { %2417 = vtanh.f32 %v2860_v50  ;;  %v1027_v52 = vpop.permute.xlu0 %1026 }
 0x689   : > { %v2865_v54 = vadd.f32 %v1027_v52, %v1011_v51 }
 0x68b   : > { %2419 = vtanh.f32 %v2865_v54 }
 0x68d   : > { %v2414_v55 = vpop.eup %2413 }
 0x68e   : > { %907 = vrot.lane.b32.xlu1 %v2414_v55, %s2568_s17 }
 0x691   : > { %v2416_v41 = vpop.eup %2415 }
 0x692   : > { %v2418_v56 = vpop.eup %2417  ;;  %909 = vrot.lane.b32.xlu1 %v2416_v41, %s2568_s17 }
 0x693   : > { %1036 = vrot.lane.b32.xlu0 %v2418_v56, %s2568_s17 }
 0x695   : > { %v2420_v57 = vpop.eup %2419 }
 0x697   : > { %1038 = vrot.lane.b32.xlu0 %v2420_v57, %s2568_s17 }
 0x700   : > { %v908_v44 = vpop.permute.xlu1 %907 }
 0x701   : > { %v2872_v58 = vmul.f32 %v2406_v26, %v908_v44 }
 0x703   : > { %1054 = vrot.lane.b32.xlu0 %v2872_v58, %s2566_s26 }
 0x704   : > { %v910_v59 = vpop.permute.xlu1 %909 }
 0x705   : > { %v2876_v60 = vmul.f32 %v2408_v29, %v910_v59  ;;  %v1037_v61 = vpop.permute.xlu0 %1036 }
 0x706   : > { %v1042_v63 = vmul.f32 %v2410_v30, %v1037_v61 }
 0x707   : > { %v2339_v0 = vpack.i.bf16 %v2876_v60, %v2872_v58  ;;  %1056 = vrot.lane.b32.xlu0 %v2876_v60, %s2566_s26 }
 0x708   : > { %1046 = vrot.lane.b32.xlu1 %v1042_v63, %s2569_s25 }
 0x709   : > { %v1039_v1 = vpop.permute.xlu0 %1038 }
 0x70a   : > { %v1043_v2 = vmul.f32 %v2412_v35, %v1039_v1 }
 0x70c   : > { %1048 = vrot.lane.b32.xlu1 %v1043_v2, %s2569_s25 }
 0x775   : > { %v1055_v3 = vpop.permute.xlu0 %1054 }
 0x779   : > { %v1057_v6 = vpop.permute.xlu0 %1056 }
 0x77a   : > { %v1047_v4 = vpop.permute.xlu1 %1046 }
 0x77b   : > { %v1060_v5 = vsel %vm439_vm1, %v1047_v4, %v1055_v3 }
 0x77c   : > { %2125 = vmatprep.mubr.msk.f32.mxu0 %vm341_vm0, %v1060_v5 }
 0x77e   : > { %v1049_v8 = vpop.permute.xlu1 %1048 }
 0x77f   : > { %v1061_v9 = vsel %vm439_vm1, %v1049_v8, %v1057_v6 }
 0x780   : > { %2126 = vmatmul.mubr.msk.f32.vlgmr.msra.gmra.mrb[10].mxu0 %vm341_vm0, %v1061_v9 }
 0x781   : > { %2254 = vmatpush3.bf16.msra.mxu0 %v2771_v49  ;;  %2132 = vmatprep.mubr.msk.f32.mxu0 %vm439_vm1, %v1047_v4 }
 0x782   : > { %2256 = vmatprep.subr.bf16.mxu0 %v2808_v47 }
 0x784   : > { %2133 = vmatmul.mubr.msk.f32.vlgmr.msra.gmra.mrb[12].mxu0 %vm439_vm1, %v1049_v8 }
 0x785   : > { %2258 = vmatpush3.bf16.msra.mxu0 %v2808_v47 }
 0x786   : > { %2260 = vmatprep.subr.bf16.mxu0 %v2820_v53 }
 0x789   : > { %2262 = vmatpush3.bf16.msra.mxu0 %v2820_v53 }
 0x78a   : > { %2264 = vmatprep.subr.bf16.mxu0 %v2771_v49 }
 0x853   : > { %v2127_v10 = vpop.f32.mrb[10].mxu0 }
 0x854   : > { %v1134_v11 = vpop.f32.mrb[11].mxu0  ;;  %v1140_v13 = vadd.f32 %v2127_v10, %v2840_v62 }
 0x855   : > { %v1135_v12 = vadd.f32 %v1134_v11, %v2840_v62 }
 0x856   : > { %v1959_v25 = vmul.f32 -1.442695, %v1140_v13 }
 0x857   : > { %2421 = vtanh.f32 %v1135_v12  ;;  %v2134_v14 = vpop.f32.mrb[12].mxu0  ;;  %v1958_v24 = vmul.f32 -1.442695, %v1135_v12 }
 0x858   : > { %v1261_v15 = vpop.f32.mrb[13].mxu0  ;;  %2423 = vtanh.f32 %v1140_v13  ;;  %v1271_v17 = vadd.f32 %v2134_v14, %v2785_v21 }
 0x859   : > { %v1270_v16 = vadd.f32 %v1261_v15, %v2788_v22 }
 0x85a   : > { %v1963_v27 = vmul.f32 -1.442695, %v1271_v17 }
 0x85b   : > { %2425 = vtanh.f32 %v1270_v16  ;;  %v1962_v26 = vmul.f32 -1.442695, %v1270_v16 }
 0x85c   : > { %2427 = vtanh.f32 %v1271_v17 }
 0x85d   : > { %2429 = vpow2.f32 %v1958_v24 }
 0x85e   : > { %2431 = vpow2.f32 %v1959_v25 }
 0x85f   : > { %2433 = vpow2.f32 %v1962_v26 }
 0x860   : > { %2435 = vpow2.f32 %v1963_v27 }
 0x861   : > { %v2422_v18 = vpop.eup %2421 }
 0x862   : > { %1161 = vrot.lane.b32.xlu1 %v2422_v18, %s2566_s26  ;;  %v2424_v19 = vpop.eup %2423 }
 0x865   : > { %v2426_v20 = vpop.eup %2425 }
 0x866   : > { %1290 = vrot.lane.b32.xlu0 %v2426_v20, %s2566_s26  ;;  %1163 = vrot.lane.b32.xlu1 %v2424_v19, %s2566_s26  ;;  %v2428_v23 = vpop.eup %2427 }
 0x867   : > { %v2430_v28 = vpop.eup %2429 }
 0x868   : > { %v2432_v29 = vpop.eup %2431  ;;  %v1149_v30 = vadd.f32 1.0, %v2430_v28 }
 0x869   : > { %v2434_v31 = vpop.eup %2433  ;;  %v1150_v32 = vadd.f32 1.0, %v2432_v29 }
 0x86a   : > { %1292 = vrot.lane.b32.xlu0 %v2428_v23, %s2566_s26  ;;  %2437 = vrcp.f32 %v1149_v30  ;;  %v1278_v33 = vadd.f32 1.0, %v2434_v31  ;;  %v2436_v34 = vpop.eup %2435 }
 0x86b   : > { %2439 = vrcp.f32 %v1150_v32  ;;  %v1279_v35 = vadd.f32 1.0, %v2436_v34 }
 0x86c   : > { %2441 = vrcp.f32 %v1278_v33 }
 0x86d   : > { %2443 = vrcp.f32 %v1279_v35 }
 0x874   : > { %v2438_v36 = vpop.eup %2437 }
 0x875   : > { %v2440_v39 = vpop.eup %2439  ;;  %v1157_v56 = vmul.f32 %v2438_v36, %v2854_v40 }
 0x876   : > { %v2442_v42 = vpop.eup %2441  ;;  %v1158_v61 = vmul.f32 %v2440_v39, %v2858_v48 }
 0x877   : > { %v2444_v52 = vpop.eup %2443  ;;  %v1286_v59 = vmul.f32 %v2442_v42, %v2860_v50 }
 0x878   : > { %v1287_v4 = vmul.f32 %v2444_v52, %v2865_v54 }
 0x8d4   : > { %v1162_v37 = vpop.permute.xlu1 %1161 }
 0x8d5   : > { %v1167_v38 = vmul.f32 %v2438_v36, %v1162_v37 }
 0x8d7   : > { %1171 = vrot.lane.b32.xlu1 %v1167_v38, %s2567_s27 }
 0x8d8   : > { %v1291_v43 = vpop.permute.xlu0 %1290  ;;  %v1164_v45 = vpop.permute.xlu1 %1163 }
 0x8d9   : > { %v1296_v46 = vmul.f32 %v2442_v42, %v1291_v43  ;;  %v1168_v51 = vmul.f32 %v2440_v39, %v1164_v45 }
 0x8db   : > { %1300 = vrot.lane.b32.xlu0 %v1296_v46, %s2567_s27  ;;  %1173 = vrot.lane.b32.xlu1 %v1168_v51, %s2567_s27 }
 0x8dc   : > { %v1293_v55 = vpop.permute.xlu0 %1292 }
 0x8dd   : > { %v1297_v41 = vmul.f32 %v2444_v52, %v1293_v55 }
 0x8df   : > { %1302 = vrot.lane.b32.xlu0 %v1297_v41, %s2567_s27 }
 0x949   : > { %v1172_v57 = vpop.permute.xlu1 %1171 }
 0x94a   : > { %v2909_v44 = vadd.f32 %v1172_v57, %v1157_v56 }
 0x94c   : > { %2445 = vtanh.f32 %v2909_v44 }
 0x94d   : > { %v1301_v63 = vpop.permute.xlu0 %1300  ;;  %v1174_v1 = vpop.permute.xlu1 %1173 }
 0x94e   : > { %v2914_v2 = vadd.f32 %v1301_v63, %v1286_v59  ;;  %v2916_v3 = vadd.f32 %v1174_v1, %v1158_v61 }
 0x950   : > { %2447 = vtanh.f32 %v2914_v2 }
 0x951   : > { %2449 = vtanh.f32 %v2916_v3  ;;  %v1303_v40 = vpop.permute.xlu0 %1302 }
 0x952   : > { %v2921_v5 = vadd.f32 %v1303_v40, %v1287_v4 }
 0x954   : > { %2451 = vtanh.f32 %v2921_v5 }
 0x956   : > { %v2446_v50 = vpop.eup %2445 }
 0x957   : > { %1183 = vrot.lane.b32.xlu1 %v2446_v50, %s2568_s17 }
 0x95a   : > { %v2448_v48 = vpop.eup %2447 }
 0x95b   : > { %v2450_v6 = vpop.eup %2449  ;;  %1312 = vrot.lane.b32.xlu0 %v2448_v48, %s2568_s17 }
 0x95c   : > { %1185 = vrot.lane.b32.xlu1 %v2450_v6, %s2568_s17 }
 0x95e   : > { %v2452_v8 = vpop.eup %2451 }
 0x95f   : > { %1314 = vrot.lane.b32.xlu0 %v2452_v8, %s2568_s17 }
 0x9c9   : > { %v1184_v54 = vpop.permute.xlu1 %1183 }
 0x9ca   : > { %v2928_v9 = vmul.f32 %v2438_v36, %v1184_v54 }
 0x9cc   : > { %1330 = vrot.lane.b32.xlu0 %v2928_v9, %s2566_s26 }
 0x9cd   : > { %v1313_v10 = vpop.permute.xlu0 %1312 }
 0x9ce   : > { %v1318_v11 = vmul.f32 %v2442_v42, %v1313_v10  ;;  %v1186_v12 = vpop.permute.xlu1 %1185 }
 0x9cf   : > { %v2932_v13 = vmul.f32 %v2440_v39, %v1186_v12 }
 0x9d0   : > { %1322 = vrot.lane.b32.xlu1 %v1318_v11, %s2569_s25 }
 0x9d1   : > { %v2344_v14 = vpack.i.bf16 %v2932_v13, %v2928_v9  ;;  %1332 = vrot.lane.b32.xlu0 %v2932_v13, %s2566_s26  ;;  %v1315_v15 = vpop.permute.xlu0 %1314  ;;  %v1744_v9 = vld [vmem:[%s3086_s8] sm:$0x3] }
 0x9d2   : > { %v1319_v16 = vmul.f32 %v2444_v52, %v1315_v15 }
 0x9d4   : > { %1324 = vrot.lane.b32.xlu1 %v1319_v16, %s2569_s25 }
 0xa3e   : > { %v1331_v17 = vpop.permute.xlu0 %1330 }
 0xa42   : > { %v1323_v18 = vpop.permute.xlu1 %1322 }
 0xa43   : > { %v1336_v19 = vsel %vm439_vm1, %v1323_v18, %v1331_v17  ;;  %v1333_v20 = vpop.permute.xlu0 %1332 }
 0xa44   : > { %2143 = vmatprep.mubr.msk.f32.mxu0 %vm341_vm0, %v1336_v19 }
 0xa46   : > { %v1325_v23 = vpop.permute.xlu1 %1324 }
 0xa47   : > { %v1337_v24 = vsel %vm439_vm1, %v1325_v23, %v1333_v20 }
 0xa48   : > { %2144 = vmatmul.mubr.msk.f32.vlgmr.msra.gmra.mrb[14].mxu0 %vm341_vm0, %v1337_v24 }
 0xa49   : > { %2266 = vmatpush3.bf16.msra.mxu0 %v2771_v49  ;;  %2150 = vmatprep.mubr.msk.f32.mxu0 %vm439_vm1, %v1323_v18 }
 0xa4a   : > { %2268 = vmatprep.subr.bf16.mxu0 %v2808_v47 }
 0xa4c   : > { %2151 = vmatmul.mubr.msk.f32.vlgmr.msra.gmra.mrb[16].mxu0 %vm439_vm1, %v1325_v23 }
 0xa4d   : > { %2270 = vmatpush3.bf16.msra.mxu0 %v2808_v47 }
 0xa4e   : > { %2272 = vmatprep.subr.bf16.mxu0 %v2820_v53 }
 0xa51   : > { %2274 = vmatpush3.bf16.msra.mxu0 %v2820_v53 }
 0xb1b   : > { %v2145_v25 = vpop.f32.mrb[14].mxu0 }
 0xb1c   : > { %v1410_v26 = vpop.f32.mrb[15].mxu0  ;;  %v1416_v28 = vadd.f32 %v2145_v25, %v2840_v62 }
 0xb1d   : > { %v1411_v27 = vadd.f32 %v1410_v26, %v2840_v62 }
 0xb1e   : > { %v1967_v35 = vmul.f32 -1.442695, %v1416_v28 }
 0xb1f   : > { %2453 = vtanh.f32 %v1411_v27  ;;  %v2152_v49 = vpop.f32.mrb[16].mxu0  ;;  %v1966_v34 = vmul.f32 -1.442695, %v1411_v27 }
 0xb20   : > { %v1537_v29 = vpop.f32.mrb[17].mxu0  ;;  %2455 = vtanh.f32 %v1416_v28  ;;  %v1547_v31 = vadd.f32 %v2152_v49, %v2785_v21 }
 0xb21   : > { %v1546_v30 = vadd.f32 %v1537_v29, %v2788_v22 }
 0xb22   : > { %v1971_v21 = vmul.f32 -1.442695, %v1547_v31 }
 0xb23   : > { %2457 = vtanh.f32 %v1546_v30  ;;  %v1970_v22 = vmul.f32 -1.442695, %v1546_v30 }
 0xb24   : > { %2459 = vtanh.f32 %v1547_v31 }
 0xb25   : > { %2461 = vpow2.f32 %v1966_v34 }
 0xb26   : > { %2463 = vpow2.f32 %v1967_v35 }
 0xb27   : > { %2465 = vpow2.f32 %v1970_v22 }
 0xb28   : > { %2467 = vpow2.f32 %v1971_v21 }
 0xb29   : > { %v2454_v47 = vpop.eup %2453 }
 0xb2a   : > { %1437 = vrot.lane.b32.xlu1 %v2454_v47, %s2566_s26  ;;  %v2456_v53 = vpop.eup %2455 }
 0xb2d   : > { %v2458_v32 = vpop.eup %2457 }
 0xb2e   : > { %1566 = vrot.lane.b32.xlu0 %v2458_v32, %s2566_s26  ;;  %1439 = vrot.lane.b32.xlu1 %v2456_v53, %s2566_s26  ;;  %v2460_v33 = vpop.eup %2459 }
 0xb2f   : > { %v2462_v36 = vpop.eup %2461 }
 0xb30   : > { %v2464_v37 = vpop.eup %2463  ;;  %v1425_v38 = vadd.f32 1.0, %v2462_v36 }
 0xb31   : > { %v2466_v39 = vpop.eup %2465  ;;  %v1426_v42 = vadd.f32 1.0, %v2464_v37 }
 0xb32   : > { %1568 = vrot.lane.b32.xlu0 %v2460_v33, %s2566_s26  ;;  %2469 = vrcp.f32 %v1425_v38  ;;  %v1554_v43 = vadd.f32 1.0, %v2466_v39  ;;  %v2468_v45 = vpop.eup %2467 }
 0xb33   : > { %2471 = vrcp.f32 %v1426_v42  ;;  %v1555_v46 = vadd.f32 1.0, %v2468_v45 }
 0xb34   : > { %2473 = vrcp.f32 %v1554_v43 }
 0xb35   : > { %2475 = vrcp.f32 %v1555_v46 }
 0xb3c   : > { %v2470_v51 = vpop.eup %2469 }
 0xb3d   : > { %v2472_v41 = vpop.eup %2471  ;;  %v1433_v50 = vmul.f32 %v2470_v51, %v2909_v44 }
 0xb3e   : > { %v2474_v56 = vpop.eup %2473  ;;  %v1434_v54 = vmul.f32 %v2472_v41, %v2916_v3 }
 0xb3f   : > { %v2476_v1 = vpop.eup %2475  ;;  %v1562_v8 = vmul.f32 %v2474_v56, %v2914_v2 }
 0xb40   : > { %v1563_v16 = vmul.f32 %v2476_v1, %v2921_v5 }
 0xb9c   : > { %v1438_v52 = vpop.permute.xlu1 %1437 }
 0xb9d   : > { %v1443_v55 = vmul.f32 %v2470_v51, %v1438_v52 }
 0xb9f   : > { %1447 = vrot.lane.b32.xlu1 %v1443_v55, %s2567_s27 }
 0xba0   : > { %v1567_v57 = vpop.permute.xlu0 %1566  ;;  %v1440_v59 = vpop.permute.xlu1 %1439 }
 0xba1   : > { %v1572_v61 = vmul.f32 %v2474_v56, %v1567_v57  ;;  %v1444_v63 = vmul.f32 %v2472_v41, %v1440_v59 }
 0xba3   : > { %1576 = vrot.lane.b32.xlu0 %v1572_v61, %s2567_s27  ;;  %1449 = vrot.lane.b32.xlu1 %v1444_v63, %s2567_s27 }
 0xba4   : > { %v1569_v4 = vpop.permute.xlu0 %1568 }
 0xba5   : > { %v1573_v40 = vmul.f32 %v2476_v1, %v1569_v4  ;;  %v2571_v4 = vmov 0.0|0.0  }
 0xba6   : > { %2275 = vmatprep.subr.bf16.mxu1 %v2571_v4 }
 0xba7   : > { %1578 = vrot.lane.b32.xlu0 %v1573_v40, %s2567_s27 }
 0xc11   : > { %v1448_v48 = vpop.permute.xlu1 %1447 }
 0xc12   : > { %v2964_v6 = vadd.f32 %v1448_v48, %v1433_v50 }
 0xc14   : > { %2477 = vtanh.f32 %v2964_v6 }
 0xc15   : > { %v1577_v10 = vpop.permute.xlu0 %1576  ;;  %v1450_v11 = vpop.permute.xlu1 %1449 }
 0xc16   : > { %v1582_v12 = vadd.f32 %v1577_v10, %v1562_v8  ;;  %v2969_v15 = vadd.f32 %v1450_v11, %v1434_v54 }
 0xc18   : > { %2479 = vtanh.f32 %v1582_v12 }
 0xc19   : > { %2481 = vtanh.f32 %v2969_v15  ;;  %v1579_v44 = vpop.permute.xlu0 %1578 }
 0xc1a   : > { %v1583_v17 = vadd.f32 %v1579_v44, %v1563_v16 }
 0xc1c   : > { %2483 = vtanh.f32 %v1583_v17 }
 0xc1e   : > { %v2478_v18 = vpop.eup %2477 }
 0xc1f   : > { %1459 = vrot.lane.b32.xlu1 %v2478_v18, %s2568_s17 }
 0xc22   : > { %v2480_v19 = vpop.eup %2479 }
 0xc23   : > { %v2482_v2 = vpop.eup %2481  ;;  %1588 = vrot.lane.b32.xlu0 %v2480_v19, %s2568_s17 }
 0xc24   : > { %1461 = vrot.lane.b32.xlu1 %v2482_v2, %s2568_s17 }
 0xc26   : > { %v2484_v3 = vpop.eup %2483 }
 0xc27   : > { %1590 = vrot.lane.b32.xlu0 %v2484_v3, %s2568_s17 }
 0xc91   : > { %v1460_v20 = vpop.permute.xlu1 %1459 }
 0xc92   : > { %v2977_v23 = vmul.f32 %v2470_v51, %v1460_v20 }
 0xc94   : > { %1606 = vrot.lane.b32.xlu0 %v2977_v23, %s2566_s26 }
 0xc95   : > { %v1589_v5 = vpop.permute.xlu0 %1588 }
 0xc96   : > { %v1594_v24 = vmul.f32 %v2474_v56, %v1589_v5  ;;  %v1462_v25 = vpop.permute.xlu1 %1461  ;;  %v1743_v5 = vld [vmem:[%s3085_s7] sm:$0x3] }
 0xc97   : > { %v1466_v26 = vmul.f32 %v2472_v41, %v1462_v25 }
 0xc98   : > { %1598 = vrot.lane.b32.xlu1 %v1594_v24, %s2569_s25 }
 0xc99   : > { %v2349_v27 = vpack.i.bf16 %v1466_v26, %v2977_v23  ;;  %1608 = vrot.lane.b32.xlu0 %v1466_v26, %s2566_s26  ;;  %v1591_v28 = vpop.permute.xlu0 %1590 }
 0xc9a   : > { %v1595_v49 = vmul.f32 %v2476_v1, %v1591_v28 }
 0xc9c   : > { %1600 = vrot.lane.b32.xlu1 %v1595_v49, %s2569_s25 }
 0xd06   : > { %v1607_v29 = vpop.permute.xlu0 %1606 }
 0xd0a   : > { %v1599_v30 = vpop.permute.xlu1 %1598 }
 0xd0b   : > { %v1612_v31 = vsel %vm439_vm1, %v1599_v30, %v1607_v29  ;;  %v1609_v47 = vpop.permute.xlu0 %1608 }
 0xd0c   : > { %2161 = vmatprep.mubr.msk.f32.mxu0 %vm341_vm0, %v1612_v31 }
 0xd0e   : > { %v1601_v53 = vpop.permute.xlu1 %1600 }
 0xd0f   : > { %v1613_v32 = vsel %vm439_vm1, %v1601_v53, %v1609_v47 }
 0xd10   : > { %2162 = vmatmul.mubr.msk.f32.vlgmr.msra.gmra.mrb[18].mxu0 %vm341_vm0, %v1613_v32 }
 0xde3   : > { %v2163_v33 = vpop.f32.mrb[18].mxu0 }
 0xde4   : > { %v1692_v34 = vadd.f32 %v2163_v33, %v2840_v62  ;;  %v1686_v35 = vpop.f32.mrb[19].mxu0 }
 0xde5   : > { %v1687_v22 = vadd.f32 %v1686_v35, %v2840_v62 }
 0xde6   : > { %2485 = vtanh.f32 %v1692_v34  ;;  %v1975_v37 = vmul.f32 -1.442695, %v1692_v34 }
 0xde7   : > { %2487 = vtanh.f32 %v1687_v22  ;;  %v1974_v38 = vmul.f32 -1.442695, %v1687_v22 }
 0xde8   : > { %2489 = vpow2.f32 %v1975_v37 }
 0xde9   : > { %2491 = vpow2.f32 %v1974_v38 }
 0xdf0   : > { %v2486_v21 = vpop.eup %2485 }
 0xdf1   : > { %v2488_v36 = vpop.eup %2487  ;;  %1715 = vrot.lane.b32.xlu0 %v2486_v21, %s2566_s26 }
 0xdf2   : > { %1713 = vrot.lane.b32.xlu1 %v2488_v36, %s2566_s26  ;;  %v2490_v39 = vpop.eup %2489  ;;  %s1860_s26 = scalar_lea.sflag [#allocation3], %s323_s16 }
 0xdf3   : > { %v2492_v42 = vpop.eup %2491  ;;  %v1702_v43 = vadd.f32 1.0, %v2490_v39 }
 0xdf4   : > { %v1701_v45 = vadd.f32 1.0, %v2492_v42 }
 0xdf5   : > { %2493 = vrcp.f32 %v1702_v43 }
 0xdf6   : > { %2495 = vrcp.f32 %v1701_v45 }
 0xdff   : > { %v2494_v46 = vpop.eup %2493 }
 0xe00   : > { %v2496_v51 = vpop.eup %2495  ;;  %v1710_v56 = vmul.f32 %v2494_v46, %v2969_v15 }
 0xe01   : > { %v1709_v59 = vmul.f32 %v2496_v51, %v2964_v6 }
 0xe63   : > { %v1716_v62 = vpop.permute.xlu0 %1715 }
 0xe64   : > { %v1720_v52 = vmul.f32 %v2494_v46, %v1716_v62  ;;  %v1714_v55 = vpop.permute.xlu1 %1713 }
 0xe65   : > { %v1719_v41 = vmul.f32 %v2496_v51, %v1714_v55 }
 0xe66   : > { %1725 = vrot.lane.b32.xlu0 %v1720_v52, %s2567_s27 }
 0xe67   : > { %1723 = vrot.lane.b32.xlu1 %v1719_v41, %s2567_s27 }
 0xed8   : > { %v1726_v57 = vpop.permute.xlu0 %1725 }
 0xed9   : > { %v1730_v61 = vadd.f32 %v1726_v57, %v1710_v56  ;;  %v1724_v63 = vpop.permute.xlu1 %1723 }
 0xeda   : > { %v1729_v1 = vadd.f32 %v1724_v63, %v1709_v59 }
 0xedb   : > { %2497 = vtanh.f32 %v1730_v61 }
 0xedc   : > { %2499 = vtanh.f32 %v1729_v1 }
 0xee5   : > { %v2498_v40 = vpop.eup %2497 }
 0xee6   : > { %v2500_v50 = vpop.eup %2499  ;;  %1737 = vrot.lane.b32.xlu0 %v2498_v40, %s2568_s17 }
 0xee7   : > { %1735 = vrot.lane.b32.xlu1 %v2500_v50, %s2568_s17  ;;  %s1936_s17 = sshll.u32 %s323_s16, 1 }
 0xee8   : > { %s325_s22 = scalar_lea.vmem [#allocation2], %s1936_s17 }
 0xee9   : > { %s1873_s23 = sshll.u32 %s325_s22, 4  ;;  %s3038_s23 = int_to_ptr.vmem [resolvable:$true] %s1873_s23 }
 0xeea   : > { %2345 = vrot.lane.b32.xlu0 %v2344_v14, %s2569_s25  ;;  %v2573_v14 = vmov 0   ;;  %s2501_s27 = scalar_lea.vmem %s3038_s23, 32  ;;  %p2508_p0 = scmp.lt.s32.totalorder %s3038_s23, %s2506_s29 }
 0xeeb   : > { %2340 = vrot.lane.b32.xlu1 %v2339_v0, %s2569_s25  ;;  %2360 = vset.pattern.permute.xlu0 %v2573_v14  ;;  %p2502_p11 = scmp.ne.s32.totalorder %s3038_s23, %s2501_s27  ;;  %p2509_p1 = scmp.lt.s32.totalorder %s2507_s14, %s2501_s27 }
 0xeec   : > { %2359 = vset.pattern.permute.xlu1 %v2573_v14 }
 0xeed   : > { %p2503_p12 = pnand %p2502_p11, %p2663_p5  ;;  %p2510_p2 = por %p2509_p1, %p2508_p0 }
 0xeef   : > { %2350 = vrot.lane.b32.xlu1 %v2349_v27, %s2569_s25  ;;  %p2504_p13 = pneg %p2503_p12 }
 0xef1   : > { %p2511_p3 = pnand %p2510_p2, %p2504_p13 }
 0xef3   : > { %1747 = vperm.xlu1 %2359, %v1744_v9  }
 0xf58   : > { %v1738_v48 = vpop.permute.xlu0 %1737 }
 0xf59   : > { %v1742_v6 = vmul.f32 %v2494_v46, %v1738_v48  ;;  %v1736_v8 = vpop.permute.xlu1 %1735 }
 0xf5a   : > { %v1741_v54 = vmul.f32 %v2496_v51, %v1736_v8 }
 0xf5c   : > { %v2354_v10 = vpack.i.bf16 %v1742_v6, %v1741_v54  ;;  %v2346_v11 = vpop.permute.xlu0 %2345 }
 0xf5d   : > { %v2341_v13 = vpop.permute.xlu1 %2340  ;;  %v2348_v12 = vunpack.i.h.bf16 %v2346_v11  ;;  %v2347_v15 = vunpack.i.l.bf16 %v2346_v11 }
 0xf5e   : > { %v2343_v58 = vunpack.i.h.bf16 %v2341_v13  ;;  %v2342_v60 = vunpack.i.l.bf16 %v2341_v13  ;;  %2355 = vrot.lane.b32.xlu0 %v2354_v10, %s2569_s25 }
 0xf5f   : > { %v2280_v16 = vpack.c.bf16 %v2348_v12, %v2347_v15 }
 0xf60   : > { %v2276_v0 = vpack.c.bf16 %v2343_v58, %v2342_v60 }
 0xf61   : > { %v2351_v44 = vpop.permute.xlu1 %2350 }
 0xf62   : > { %2278 = vmatpush3.bf16.xpose.msk.msra.mxu1 %vm3015_vm3, %v2276_v0  ;;  %v2353_v17 = vunpack.i.h.bf16 %v2351_v44  ;;  %v2352_v18 = vunpack.i.l.bf16 %v2351_v44 }
 0xf63   : > { %2279 = vmatprep.subr.bf16.mxu1 %v2571_v4 }
 0xf64   : > { %v2284_v19 = vpack.c.bf16 %v2353_v17, %v2352_v18 }
 0xf6a   : > { %2282 = vmatpush3.bf16.xpose.msk.msra.mxu1 %vm3015_vm3, %v2280_v16 }
 0xf6b   : > { %2283 = vmatprep.subr.bf16.mxu1 %v2571_v4 }
 0xf72   : > { %2286 = vmatpush3.bf16.xpose.msk.msra.mxu1 %vm3015_vm3, %v2284_v19  ;;  %v1748_v24 = vpop.permute.xlu1 %1747 }
 0xf73   : > { %2287 = vmatprep.subr.bf16.mxu1 %v2571_v4 }
 0xfd0   : > { %v2356_v2 = vpop.permute.xlu0 %2355 }
 0xfd1   : > { %v2358_v3 = vunpack.i.h.bf16 %v2356_v2  ;;  %v2357_v20 = vunpack.i.l.bf16 %v2356_v2 }
 0xfd3   : > { %v2288_v23 = vpack.c.bf16 %v2358_v3, %v2357_v20 }
 0xfd5   : > { %2290 = vmatpush3.bf16.xpose.msk.msra.mxu1 %vm3015_vm3, %v2288_v23 }
 0xfdc   : > { %2181 = vmatmul.mubr.msk.f32.vlgmr.msra.gmra.mrb[6].mxu1 %vm439_vm1, %v1743_v5 }
0x10af   : > { %v1853_v25 = vpop.f32.mrb[6].mxu1 }
0x10b0   : > { %v1854_v26 = vadd.f32 %v1853_v25, %v1748_v24  ;;  %v2182_v27 = vpop.f32.mrb[7].mxu1 }
0x10b2   : > { %1858 = vst.msk [vmem:[%s325_s22] sm:$0x3] %vm1857_vm4, %v1854_v26 }
0x10b3   : > { %2514 = shalt.err (!%p2511_p3)
}
0x10b4   : > { %s2515_s16 = scalar_lea.hbm %s3036_s28, 32  ;;  %s2519_s22 = scalar_lea.hbm %s3087_s9, 64 }
0x10b5   : > { %p2516_p4 = scmp.ne.s32.totalorder %s3036_s28, %s2515_s16  ;;  %p2520_p9 = scmp.lt.u32.totalorder %s3036_s28, %s3087_s9 }
0x10b6   : > { %p2521_p10 = scmp.lt.u32.totalorder %s2519_s22, %s2515_s16  ;;  %p2523_p12 = scmp.lt.u32.totalorder %s2515_s16, %s3036_s28 }
0x10b7   : > { %p2517_p7 = pnand %p2516_p4, %p2663_p5 }
0x10b8   : > { %p2522_p11 = por %p2521_p10, %p2520_p9 }
0x10b9   : > { %p2518_p8 = pneg %p2517_p7 }
0x10ba   : > { %p2524_p13 = por %p2523_p12, %p2522_p11 }
0x10bc   : > { %p2525_p0 = pnand %p2524_p13, %p2518_p8 }
0x10be   : > { %2528 = shalt.err (!%p2525_p0)
}
0x10bf   : > { %2291 = dma.vmem_to_hbm [thread:$0]  (%p2663_p5), %s3038_s23, 32, %s3036_s28, %s1860_s26  }
0x10c0 PF: > { %p2297_p1 = scmp.ge.s32.totalorder %s2563_s12, 2  ;;  %s1885_s27 = sand.u32 1, %s2551_s30  }
0x10c1   : > { %s1886_s13 = scalar_lea.sflag [#allocation3], %s1885_s27 }
0x10c2   : > { %p2294_p2 = pnand %p2297_p1, %p2667_p6 }
0x10c4   : > { %2546 = dma.done.wait (!%p2294_p2), %s1886_s13, 32  }
0x10c5   : > { %2548 = vsyncadd (!%p2294_p2), %s1886_s13, 4294967264  ;;  %p19_p3 = scmp.ge.s32.totalorder %s2650_s15, 4   ;;  %s3092_s30 = smov %s2555_s10 }
0x10c6   : > { %s3093_s10 = smov %s2559_s11  ;;  %s3094_s11 = smov %s2661_s18 }
0x10c7   : > { %s3095_s12 = smov %s2650_s15  ;;  %21 = sbr.rel (!%p19_p3) target bundleno = 3 (0x3), region = 91 }
0x10ce   :  { %1891 = vsyncpa [#allocation3], 1 }
0x10cf   :  { %1893 = vsyncpa [#allocation3 + $0x1], 1 }

</bundles_post_ra>
